<compile_context>
chip_gen: v5e
topology: v5e:2x2
jax: 0.10.0
libtpu: 0.0.40
codegen_flags: <defaults>
</compile_context>

<pallas_src>
import functools

import jax
import jax.numpy as jnp
import numpy as np
from jax.experimental import pallas as pl
from jax.experimental.pallas import tpu as pltpu  # noqa: F401

# ----------------------------- model dims ----------------------------------
N = 2          # batch
L = 16         # sequence length
D_MODEL = 32
NHEAD = 4
HEAD_DIM = D_MODEL // NHEAD
DIM_FF = 64
LN_EPS = 1e-5
ROWS = L * N                       # fused (seq, batch) rows, native torch order
VEC_LANES = 2 * D_MODEL + DIM_FF   # 128 lanes in the packed vector slab

# rows of the packed (8, VEC_LANES) vector slab
_BV, _BO, _B2, _G1, _BE1, _G2, _BE2, _BQK_B1 = range(8)


# ----------------------------- Pallas kernel --------------------------------
def _layer_norm(x, gamma, beta, eps):
    # two independent reductions; var = E[x^2] - mu^2 (shorter dep chain)
    d = x.shape[-1]
    inv_d = 1.0 / d
    mu = jnp.sum(x, axis=-1, keepdims=True) * inv_d
    ex2 = jnp.sum(x * x, axis=-1, keepdims=True) * inv_d
    var = ex2 - mu * mu
    return (x - mu) * jax.lax.rsqrt(var + eps) * gamma + beta


def encoder_layer_kernel(
    src_ref, pos_ref,          # (R, D) each, rows in native (L, N) order
    w_slab_ref,                # (D, 6D)  = [Wq*scale | Wk | Wv | Wo | W1]
    w2_ref,                    # (FF, D)
    vec_ref,                   # (8, VEC_LANES) bias / LayerNorm slab
    out_ref,                   # (R, D)
    *, nhead, batch,
):
    x = src_ref[...]
    p = pos_ref[...]
    r, d = x.shape
    hd = d // nhead

    vecs = vec_ref[...]
    bv = vecs[_BV:_BV + 1, 0:d]
    bo = vecs[_BO:_BO + 1, 0:d]
    b2 = vecs[_B2:_B2 + 1, 0:d]
    g1 = vecs[_G1:_G1 + 1, 0:d]
    be1 = vecs[_BE1:_BE1 + 1, 0:d]
    g2 = vecs[_G2:_G2 + 1, 0:d]
    be2 = vecs[_BE2:_BE2 + 1, 0:d]
    bqk = vecs[_BQK_B1:_BQK_B1 + 1, 0:2 * d]            # (1, 2D)
    b1 = vecs[_BQK_B1:_BQK_B1 + 1, 2 * d:2 * d + DIM_FF]  # (1, FF)

    w = w_slab_ref[...]
    w_qkv = w[:, 0:3 * d]          # (D, 3D)  [Wq*scale | Wk | Wv]
    w_o = w[:, 3 * d:4 * d]        # (D, D)
    w_1 = w[:, 4 * d:4 * d + DIM_FF]  # (D, FF)

    # --- fused Q|K|V in-projection: one MXU pass (q = k = src + pos; v = src)
    lhs = jnp.concatenate([x + p, x], axis=0)            # (2R, D)
    full = jnp.dot(lhs, w_qkv, preferred_element_type=jnp.float32)  # (2R, 3D)
    qk = full[0:r, 0:2 * d] + bqk                        # (R, 2D)
    v = full[r:2 * r, 2 * d:3 * d] + bv                  # (R, D)

    # --- additive block-diagonal batch mask (rows fused in (L, N) order)
    row_b = jax.lax.broadcasted_iota(jnp.int32, (r, r), 0) % batch
    col_b = jax.lax.broadcasted_iota(jnp.int32, (r, r), 1) % batch
    mask_bias = jnp.where(row_b == col_b, 0.0, -1e30)    # (R, R) f32

    # --- per-head attention (static loop, nhead == 4)
    qkT_dims = (((1,), (1,)), ((), ()))                  # contract last dims
    o_heads = []
    for h in range(nhead):
        sl = slice(h * hd, (h + 1) * hd)
        qh = qk[:, h * hd:(h + 1) * hd]
        kh = qk[:, d + h * hd:d + (h + 1) * hd]
        vh = v[:, sl]
        s = jax.lax.dot_general(qh, kh, qkT_dims,
                                preferred_element_type=jnp.float32)  # (R, R)
        s = s + mask_bias
        s = s - jnp.max(s, axis=-1, keepdims=True)
        e = jnp.exp(s)
        a = e * pl.reciprocal(jnp.sum(e, axis=-1, keepdims=True), approx=True)
        o_heads.append(jnp.dot(a, vh, preferred_element_type=jnp.float32))

    # --- single output projection over lane-concatenated head outputs
    o_cat = jnp.concatenate(o_heads, axis=-1)            # (R, D)
    attn = jnp.dot(o_cat, w_o, preferred_element_type=jnp.float32) + bo

    # residual + LayerNorm 1   (dropout1 == identity in eval mode)
    y = _layer_norm(x + attn, g1, be1, LN_EPS)

    # FFN: linear2(relu(linear1(y)))   (dropout == identity in eval mode)
    h1 = jnp.dot(y, w_1, preferred_element_type=jnp.float32) + b1
    h1 = jnp.maximum(h1, 0.0)
    ff = jnp.dot(h1, w2_ref[...], preferred_element_type=jnp.float32) + b2

    # residual + LayerNorm 2   (dropout2 == identity in eval mode)
    out_ref[...] = _layer_norm(y + ff, g2, be2, LN_EPS)


# ----------------------------- wrapper ---------------------------------------
def transformer_encoder_layer(src_lne, pos_lne, packed):
    """src_lne, pos_lne: (L, N, D) float32 (PyTorch layout) -> (L, N, D)."""
    l, n, d = src_lne.shape
    src_flat = src_lne.reshape(l * n, d)      # free row-major reshape, no transpose
    pos_flat = pos_lne.reshape(l * n, d)

    args = (src_flat, pos_flat, packed["w_slab"], packed["w2_t"], packed["vec_slab"])

    def full_spec(shape):
        return pl.BlockSpec(shape, lambda: (0,) * len(shape))

    out_flat = pl.pallas_call(
        functools.partial(encoder_layer_kernel, nhead=NHEAD, batch=n),
        out_shape=jax.ShapeDtypeStruct((l * n, d), jnp.float32),
        in_specs=[full_spec(a.shape) for a in args],
        out_specs=full_spec((l * n, d)),
    )(*args)
    return out_flat.reshape(l, n, d)


# ----------------------------- pure-JAX reference ----------------------------
def reference(src_lne, pos_lne, params):
    x = src_lne                                # (L, N, D)
    qk_in = x + pos_lne
    scale = float(HEAD_DIM) ** -0.5
    q = (qk_in @ params["wq_t"] + params["bq"]) * scale
    k = qk_in @ params["wk_t"] + params["bk"]
    v = x @ params["wv_t"] + params["bv"]

    def split(t):   # (L, N, D) -> (N, H, L, hd)
        return t.reshape(L, N, NHEAD, HEAD_DIM).transpose(1, 2, 0, 3)

    qh, kh, vh = split(q), split(k), split(v)
    s = jnp.einsum("nhqd,nhkd->nhqk", qh, kh)
    a = jax.nn.softmax(s, axis=-1)
    o = jnp.einsum("nhqk,nhkd->nhqd", a, vh)
    o = o.transpose(2, 0, 1, 3).reshape(L, N, D_MODEL)
    o = o @ params["wo_t"] + params["bo"]

    def ln(t, g, b):
        mu = jnp.mean(t, -1, keepdims=True)
        var = jnp.mean((t - mu) ** 2, -1, keepdims=True)
        return (t - mu) / jnp.sqrt(var + LN_EPS) * g + b

    y = ln(x + o, params["g1"], params["be1"])
    ff = jnp.maximum(y @ params["w1_t"] + params["b1"], 0.0) @ params["w2_t"] + params["b2"]
    return ln(y + ff, params["g2"], params["be2"])


# ----------------------------- param init / packing --------------------------
def init_params(key):
    ks = jax.random.split(key, 16)
    sc = 0.1
    # nn.MultiheadAttention in_proj (3D, D) split into wq/wk/wv; out_proj (D, D)
    wq = sc * jax.random.normal(ks[0], (D_MODEL, D_MODEL), jnp.float32)
    wk = sc * jax.random.normal(ks[1], (D_MODEL, D_MODEL), jnp.float32)
    wv = sc * jax.random.normal(ks[2], (D_MODEL, D_MODEL), jnp.float32)
    wo = sc * jax.random.normal(ks[3], (D_MODEL, D_MODEL), jnp.float32)
    w1 = sc * jax.random.normal(ks[4], (DIM_FF, D_MODEL), jnp.float32)   # (out, in)
    w2 = sc * jax.random.normal(ks[5], (D_MODEL, DIM_FF), jnp.float32)   # (out, in)
    return {
        # pre-transposed so everything is x @ W_t
        "wq_t": wq.T, "wk_t": wk.T, "wv_t": wv.T, "wo_t": wo.T,
        "w1_t": w1.T, "w2_t": w2.T,
        "bq": sc * jax.random.normal(ks[6], (1, D_MODEL), jnp.float32),
        "bk": sc * jax.random.normal(ks[7], (1, D_MODEL), jnp.float32),
        "bv": sc * jax.random.normal(ks[8], (1, D_MODEL), jnp.float32),
        "bo": sc * jax.random.normal(ks[9], (1, D_MODEL), jnp.float32),
        "b1": sc * jax.random.normal(ks[10], (1, DIM_FF), jnp.float32),
        "b2": sc * jax.random.normal(ks[11], (1, D_MODEL), jnp.float32),
        # non-trivial LayerNorm affine so the packed-slab path is exercised
        "g1": 1.0 + 0.1 * jax.random.normal(ks[12], (1, D_MODEL), jnp.float32),
        "be1": 0.1 * jax.random.normal(ks[13], (1, D_MODEL), jnp.float32),
        "g2": 1.0 + 0.1 * jax.random.normal(ks[14], (1, D_MODEL), jnp.float32),
        "be2": 0.1 * jax.random.normal(ks[15], (1, D_MODEL), jnp.float32),
    }


def pack_params(params):
    """One-time constant folding / operand packing (5 kernel operands total)."""
    scale = float(HEAD_DIM) ** -0.5
    # (D, 6D) weight slab: [Wq*scale | Wk | Wv | Wo | W1]
    w_slab = jnp.concatenate(
        [params["wq_t"] * scale, params["wk_t"], params["wv_t"],
         params["wo_t"], params["w1_t"]], axis=1)                        # (32, 192)
    # fused Q|K bias with the q-scale folded in
    bqk = jnp.concatenate([params["bq"] * scale, params["bk"]], axis=1)  # (1, 64)
    # (8, 128) vector slab: rows 0-6 = D-wide vectors, row 7 = [bqk | b1]
    top = jnp.concatenate(
        [params["bv"], params["bo"], params["b2"], params["g1"],
         params["be1"], params["g2"], params["be2"]], axis=0)            # (7, 32)
    top = jnp.pad(top, ((0, 0), (0, VEC_LANES - D_MODEL)))               # (7, 128)
    bottom = jnp.concatenate([bqk, params["b1"]], axis=1)                # (1, 128)
    vec_slab = jnp.concatenate([top, bottom], axis=0)                    # (8, 128)
    return {"w_slab": w_slab, "w2_t": params["w2_t"], "vec_slab": vec_slab}


# ----------------------------- main -------------------------------------------
if __name__ == "__main__":
    key = jax.random.PRNGKey(0)
    k_src, k_pos, k_par = jax.random.split(key, 3)

    # PyTorch forward takes (L, N, E); the kernel consumes this layout directly
    # (flattened row-major to (L*N, E)), so no host-side transposes are needed.
    src_lne = jax.random.normal(k_src, (L, N, D_MODEL), jnp.float32)
    pos_lne = jax.random.normal(k_pos, (L, N, D_MODEL), jnp.float32)
    params = init_params(k_par)
    packed = pack_params(params)

    out_lne = jax.block_until_ready(
        transformer_encoder_layer(src_lne, pos_lne, packed))

    ref_lne = reference(src_lne, pos_lne, params)
    # tolerance 1e-3: softmax uses the EUP approx reciprocal (pl.reciprocal)
    np.testing.assert_allclose(np.asarray(out_lne), np.asarray(ref_lne),
                               rtol=1e-3, atol=1e-3)

    # TODO(synk): dropout layers are identity (eval mode); training-mode RNG
    # dropout and the optional src_mask / src_key_padding_mask (None here) were
    # not translated.
    print("KERNEL_OK")
</pallas_src>

<mosaic_0001>
module attributes {stable_mosaic.version = 11 : i64} {
  func.func @encoder_layer_kernel(%arg0: memref<32x32xf32, #tpu.memory_space<vmem>>, %arg1: memref<32x32xf32, #tpu.memory_space<vmem>>, %arg2: memref<32x192xf32, #tpu.memory_space<vmem>>, %arg3: memref<64x32xf32, #tpu.memory_space<vmem>>, %arg4: memref<8x128xf32, #tpu.memory_space<vmem>>, %arg5: memref<32x32xf32, #tpu.memory_space<vmem>>) attributes {dimension_semantics = [], scalar_prefetch = 0 : i64, scratch_operands = 0 : i64, tpu.core_type = #tpu.core_type<tc>} {
    %c0 = arith.constant 0 : index
    %c0_0 = arith.constant 0 : index
    %0 = vector.load %arg0[%c0, %c0_0] : memref<32x32xf32, #tpu.memory_space<vmem>>, vector<32x32xf32>
    %c0_1 = arith.constant 0 : index
    %c0_2 = arith.constant 0 : index
    %1 = vector.load %arg1[%c0_1, %c0_2] : memref<32x32xf32, #tpu.memory_space<vmem>>, vector<32x32xf32>
    %c0_3 = arith.constant 0 : index
    %c0_4 = arith.constant 0 : index
    %2 = vector.load %arg4[%c0_3, %c0_4] : memref<8x128xf32, #tpu.memory_space<vmem>>, vector<8x128xf32>
    %3 = vector.extract_strided_slice %2 {offsets = [0, 0], sizes = [1, 32], strides = [1, 1]} : vector<8x128xf32> to vector<1x32xf32>
    %4 = vector.extract_strided_slice %2 {offsets = [1, 0], sizes = [1, 32], strides = [1, 1]} : vector<8x128xf32> to vector<1x32xf32>
    %5 = vector.extract_strided_slice %2 {offsets = [2, 0], sizes = [1, 32], strides = [1, 1]} : vector<8x128xf32> to vector<1x32xf32>
    %6 = vector.extract_strided_slice %2 {offsets = [3, 0], sizes = [1, 32], strides = [1, 1]} : vector<8x128xf32> to vector<1x32xf32>
    %7 = vector.extract_strided_slice %2 {offsets = [4, 0], sizes = [1, 32], strides = [1, 1]} : vector<8x128xf32> to vector<1x32xf32>
    %8 = vector.extract_strided_slice %2 {offsets = [5, 0], sizes = [1, 32], strides = [1, 1]} : vector<8x128xf32> to vector<1x32xf32>
    %9 = vector.extract_strided_slice %2 {offsets = [6, 0], sizes = [1, 32], strides = [1, 1]} : vector<8x128xf32> to vector<1x32xf32>
    %10 = vector.extract_strided_slice %2 {offsets = [7, 0], sizes = [1, 64], strides = [1, 1]} : vector<8x128xf32> to vector<1x64xf32>
    %11 = vector.extract_strided_slice %2 {offsets = [7, 64], sizes = [1, 64], strides = [1, 1]} : vector<8x128xf32> to vector<1x64xf32>
    %c0_5 = arith.constant 0 : index
    %c0_6 = arith.constant 0 : index
    %12 = vector.load %arg2[%c0_5, %c0_6] : memref<32x192xf32, #tpu.memory_space<vmem>>, vector<32x192xf32>
    %13 = vector.extract_strided_slice %12 {offsets = [0, 0], sizes = [32, 96], strides = [1, 1]} : vector<32x192xf32> to vector<32x96xf32>
    %14 = vector.extract_strided_slice %12 {offsets = [0, 96], sizes = [32, 32], strides = [1, 1]} : vector<32x192xf32> to vector<32x32xf32>
    %15 = vector.extract_strided_slice %12 {offsets = [0, 128], sizes = [32, 64], strides = [1, 1]} : vector<32x192xf32> to vector<32x64xf32>
    %16 = arith.addf %0, %1 : vector<32x32xf32>
    %17 = tpu.concatenate %16, %0 in 0 : vector<32x32xf32>, vector<32x32xf32> -> vector<64x32xf32>
    %cst = arith.constant dense<0.000000e+00> : vector<64x96xf32>
    %18 = tpu.matmul %17, %13, %cst {dimension_numbers = #tpu.dot_dimension_numbers<[1], [0], [0], [1], [0, 0, 1, 1], [], []>} : vector<64x32xf32>, vector<32x96xf32>, vector<64x96xf32> -> vector<64x96xf32>
    %19 = vector.extract_strided_slice %18 {offsets = [0, 0], sizes = [32, 64], strides = [1, 1]} : vector<64x96xf32> to vector<32x64xf32>
    %20 = vector.broadcast %10 : vector<1x64xf32> to vector<32x64xf32>
    %21 = arith.addf %19, %20 : vector<32x64xf32>
    %22 = vector.extract_strided_slice %18 {offsets = [32, 64], sizes = [32, 32], strides = [1, 1]} : vector<64x96xf32> to vector<32x32xf32>
    %23 = vector.broadcast %3 : vector<1x32xf32> to vector<32x32xf32>
    %24 = arith.addf %22, %23 : vector<32x32xf32>
    %25 = tpu.iota {dimensions = array<i32: 0>} : vector<32x32xi32>
    %c2_i32 = arith.constant 2 : i32
    %c0_i32 = arith.constant 0 : i32
    %26 = arith.cmpi eq, %c2_i32, %c0_i32 : i32
    %c1_i32 = arith.constant 1 : i32
    %27 = arith.select %26, %c1_i32, %c2_i32 : i32
    %28 = vector.broadcast %27 : i32 to vector<32x32xi32>
    %29 = arith.remsi %25, %28 : vector<32x32xi32>
    %c0_i32_7 = arith.constant 0 : i32
    %30 = vector.broadcast %c0_i32_7 : i32 to vector<32x32xi32>
    %31 = arith.cmpi ne, %29, %30 : vector<32x32xi32>
    %c0_i32_8 = arith.constant 0 : i32
    %32 = vector.broadcast %c0_i32_8 : i32 to vector<32x32xi32>
    %33 = arith.cmpi slt, %29, %32 : vector<32x32xi32>
    %c0_i32_9 = arith.constant 0 : i32
    %34 = arith.cmpi slt, %27, %c0_i32_9 : i32
    %35 = vector.broadcast %34 : i1 to vector<32x32xi1>
    %36 = vector.broadcast %35 : vector<32x32xi1> to vector<32x32xi1>
    %37 = arith.xori %33, %36 : vector<32x32xi1>
    %38 = arith.andi %37, %31 : vector<32x32xi1>
    %39 = vector.broadcast %27 : i32 to vector<32x32xi32>
    %40 = arith.addi %29, %39 : vector<32x32xi32>
    %41 = arith.select %38, %40, %29 : vector<32x32xi1>, vector<32x32xi32>
    %42 = tpu.iota {dimensions = array<i32: 1>} : vector<32x32xi32>
    %c2_i32_10 = arith.constant 2 : i32
    %c0_i32_11 = arith.constant 0 : i32
    %43 = arith.cmpi eq, %c2_i32_10, %c0_i32_11 : i32
    %c1_i32_12 = arith.constant 1 : i32
    %44 = arith.select %43, %c1_i32_12, %c2_i32_10 : i32
    %45 = vector.broadcast %44 : i32 to vector<32x32xi32>
    %46 = arith.remsi %42, %45 : vector<32x32xi32>
    %c0_i32_13 = arith.constant 0 : i32
    %47 = vector.broadcast %c0_i32_13 : i32 to vector<32x32xi32>
    %48 = arith.cmpi ne, %46, %47 : vector<32x32xi32>
    %c0_i32_14 = arith.constant 0 : i32
    %49 = vector.broadcast %c0_i32_14 : i32 to vector<32x32xi32>
    %50 = arith.cmpi slt, %46, %49 : vector<32x32xi32>
    %c0_i32_15 = arith.constant 0 : i32
    %51 = arith.cmpi slt, %44, %c0_i32_15 : i32
    %52 = vector.broadcast %51 : i1 to vector<32x32xi1>
    %53 = vector.broadcast %52 : vector<32x32xi1> to vector<32x32xi1>
    %54 = arith.xori %50, %53 : vector<32x32xi1>
    %55 = arith.andi %54, %48 : vector<32x32xi1>
    %56 = vector.broadcast %44 : i32 to vector<32x32xi32>
    %57 = arith.addi %46, %56 : vector<32x32xi32>
    %58 = arith.select %55, %57, %46 : vector<32x32xi1>, vector<32x32xi32>
    %59 = arith.cmpi eq, %41, %58 : vector<32x32xi32>
    %cst_16 = arith.constant 0.000000e+00 : f32
    %cst_17 = arith.constant -1.000000e+30 : f32
    %60 = vector.broadcast %cst_16 : f32 to vector<32x32xf32>
    %61 = vector.broadcast %cst_17 : f32 to vector<32x32xf32>
    %62 = arith.select %59, %60, %61 : vector<32x32xi1>, vector<32x32xf32>
    %63 = vector.extract_strided_slice %21 {offsets = [0, 0], sizes = [32, 8], strides = [1, 1]} : vector<32x64xf32> to vector<32x8xf32>
    %64 = vector.extract_strided_slice %21 {offsets = [0, 32], sizes = [32, 8], strides = [1, 1]} : vector<32x64xf32> to vector<32x8xf32>
    %65 = vector.extract_strided_slice %24 {offsets = [0, 0], sizes = [32, 8], strides = [1, 1]} : vector<32x32xf32> to vector<32x8xf32>
    %cst_18 = arith.constant dense<0.000000e+00> : vector<32x32xf32>
    %66 = tpu.matmul %63, %64, %cst_18 {dimension_numbers = #tpu.dot_dimension_numbers<[1], [1], [0], [0], [0, 0, 1, 0], [], []>} : vector<32x8xf32>, vector<32x8xf32>, vector<32x32xf32> -> vector<32x32xf32>
    %67 = arith.addf %66, %62 : vector<32x32xf32>
    %cst_19 = arith.constant dense<0xFF800000> : vector<32xf32>
    %68 = vector.multi_reduction <maximumf>, %67, %cst_19 [1] : vector<32x32xf32> to vector<32xf32>
    %69 = vector.shape_cast %68 : vector<32xf32> to vector<32x1xf32>
    %70 = vector.broadcast %69 : vector<32x1xf32> to vector<32x32xf32>
    %71 = arith.subf %67, %70 : vector<32x32xf32>
    %72 = math.exp %71 : vector<32x32xf32>
    %cst_20 = arith.constant dense<0.000000e+00> : vector<32xf32>
    %73 = vector.multi_reduction <add>, %72, %cst_20 [1] : vector<32x32xf32> to vector<32xf32>
    %74 = vector.shape_cast %73 : vector<32xf32> to vector<32x1xf32>
    %75 = tpu.reciprocal %74 {approx = true} : vector<32x1xf32> -> vector<32x1xf32>
    %76 = vector.broadcast %75 : vector<32x1xf32> to vector<32x32xf32>
    %77 = arith.mulf %72, %76 : vector<32x32xf32>
    %cst_21 = arith.constant dense<0.000000e+00> : vector<32x8xf32>
    %78 = tpu.matmul %77, %65, %cst_21 {dimension_numbers = #tpu.dot_dimension_numbers<[1], [0], [0], [1], [0, 0, 1, 1], [], []>} : vector<32x32xf32>, vector<32x8xf32>, vector<32x8xf32> -> vector<32x8xf32>
    %79 = vector.extract_strided_slice %21 {offsets = [0, 8], sizes = [32, 8], strides = [1, 1]} : vector<32x64xf32> to vector<32x8xf32>
    %80 = vector.extract_strided_slice %21 {offsets = [0, 40], sizes = [32, 8], strides = [1, 1]} : vector<32x64xf32> to vector<32x8xf32>
    %81 = vector.extract_strided_slice %24 {offsets = [0, 8], sizes = [32, 8], strides = [1, 1]} : vector<32x32xf32> to vector<32x8xf32>
    %cst_22 = arith.constant dense<0.000000e+00> : vector<32x32xf32>
    %82 = tpu.matmul %79, %80, %cst_22 {dimension_numbers = #tpu.dot_dimension_numbers<[1], [1], [0], [0], [0, 0, 1, 0], [], []>} : vector<32x8xf32>, vector<32x8xf32>, vector<32x32xf32> -> vector<32x32xf32>
    %83 = arith.addf %82, %62 : vector<32x32xf32>
    %cst_23 = arith.constant dense<0xFF800000> : vector<32xf32>
    %84 = vector.multi_reduction <maximumf>, %83, %cst_23 [1] : vector<32x32xf32> to vector<32xf32>
    %85 = vector.shape_cast %84 : vector<32xf32> to vector<32x1xf32>
    %86 = vector.broadcast %85 : vector<32x1xf32> to vector<32x32xf32>
    %87 = arith.subf %83, %86 : vector<32x32xf32>
    %88 = math.exp %87 : vector<32x32xf32>
    %cst_24 = arith.constant dense<0.000000e+00> : vector<32xf32>
    %89 = vector.multi_reduction <add>, %88, %cst_24 [1] : vector<32x32xf32> to vector<32xf32>
    %90 = vector.shape_cast %89 : vector<32xf32> to vector<32x1xf32>
    %91 = tpu.reciprocal %90 {approx = true} : vector<32x1xf32> -> vector<32x1xf32>
    %92 = vector.broadcast %91 : vector<32x1xf32> to vector<32x32xf32>
    %93 = arith.mulf %88, %92 : vector<32x32xf32>
    %cst_25 = arith.constant dense<0.000000e+00> : vector<32x8xf32>
    %94 = tpu.matmul %93, %81, %cst_25 {dimension_numbers = #tpu.dot_dimension_numbers<[1], [0], [0], [1], [0, 0, 1, 1], [], []>} : vector<32x32xf32>, vector<32x8xf32>, vector<32x8xf32> -> vector<32x8xf32>
    %95 = vector.extract_strided_slice %21 {offsets = [0, 16], sizes = [32, 8], strides = [1, 1]} : vector<32x64xf32> to vector<32x8xf32>
    %96 = vector.extract_strided_slice %21 {offsets = [0, 48], sizes = [32, 8], strides = [1, 1]} : vector<32x64xf32> to vector<32x8xf32>
    %97 = vector.extract_strided_slice %24 {offsets = [0, 16], sizes = [32, 8], strides = [1, 1]} : vector<32x32xf32> to vector<32x8xf32>
    %cst_26 = arith.constant dense<0.000000e+00> : vector<32x32xf32>
    %98 = tpu.matmul %95, %96, %cst_26 {dimension_numbers = #tpu.dot_dimension_numbers<[1], [1], [0], [0], [0, 0, 1, 0], [], []>} : vector<32x8xf32>, vector<32x8xf32>, vector<32x32xf32> -> vector<32x32xf32>
    %99 = arith.addf %98, %62 : vector<32x32xf32>
    %cst_27 = arith.constant dense<0xFF800000> : vector<32xf32>
    %100 = vector.multi_reduction <maximumf>, %99, %cst_27 [1] : vector<32x32xf32> to vector<32xf32>
    %101 = vector.shape_cast %100 : vector<32xf32> to vector<32x1xf32>
    %102 = vector.broadcast %101 : vector<32x1xf32> to vector<32x32xf32>
    %103 = arith.subf %99, %102 : vector<32x32xf32>
    %104 = math.exp %103 : vector<32x32xf32>
    %cst_28 = arith.constant dense<0.000000e+00> : vector<32xf32>
    %105 = vector.multi_reduction <add>, %104, %cst_28 [1] : vector<32x32xf32> to vector<32xf32>
    %106 = vector.shape_cast %105 : vector<32xf32> to vector<32x1xf32>
    %107 = tpu.reciprocal %106 {approx = true} : vector<32x1xf32> -> vector<32x1xf32>
    %108 = vector.broadcast %107 : vector<32x1xf32> to vector<32x32xf32>
    %109 = arith.mulf %104, %108 : vector<32x32xf32>
    %cst_29 = arith.constant dense<0.000000e+00> : vector<32x8xf32>
    %110 = tpu.matmul %109, %97, %cst_29 {dimension_numbers = #tpu.dot_dimension_numbers<[1], [0], [0], [1], [0, 0, 1, 1], [], []>} : vector<32x32xf32>, vector<32x8xf32>, vector<32x8xf32> -> vector<32x8xf32>
    %111 = vector.extract_strided_slice %21 {offsets = [0, 24], sizes = [32, 8], strides = [1, 1]} : vector<32x64xf32> to vector<32x8xf32>
    %112 = vector.extract_strided_slice %21 {offsets = [0, 56], sizes = [32, 8], strides = [1, 1]} : vector<32x64xf32> to vector<32x8xf32>
    %113 = vector.extract_strided_slice %24 {offsets = [0, 24], sizes = [32, 8], strides = [1, 1]} : vector<32x32xf32> to vector<32x8xf32>
    %cst_30 = arith.constant dense<0.000000e+00> : vector<32x32xf32>
    %114 = tpu.matmul %111, %112, %cst_30 {dimension_numbers = #tpu.dot_dimension_numbers<[1], [1], [0], [0], [0, 0, 1, 0], [], []>} : vector<32x8xf32>, vector<32x8xf32>, vector<32x32xf32> -> vector<32x32xf32>
    %115 = arith.addf %114, %62 : vector<32x32xf32>
    %cst_31 = arith.constant dense<0xFF800000> : vector<32xf32>
    %116 = vector.multi_reduction <maximumf>, %115, %cst_31 [1] : vector<32x32xf32> to vector<32xf32>
    %117 = vector.shape_cast %116 : vector<32xf32> to vector<32x1xf32>
    %118 = vector.broadcast %117 : vector<32x1xf32> to vector<32x32xf32>
    %119 = arith.subf %115, %118 : vector<32x32xf32>
    %120 = math.exp %119 : vector<32x32xf32>
    %cst_32 = arith.constant dense<0.000000e+00> : vector<32xf32>
    %121 = vector.multi_reduction <add>, %120, %cst_32 [1] : vector<32x32xf32> to vector<32xf32>
    %122 = vector.shape_cast %121 : vector<32xf32> to vector<32x1xf32>
    %123 = tpu.reciprocal %122 {approx = true} : vector<32x1xf32> -> vector<32x1xf32>
    %124 = vector.broadcast %123 : vector<32x1xf32> to vector<32x32xf32>
    %125 = arith.mulf %120, %124 : vector<32x32xf32>
    %cst_33 = arith.constant dense<0.000000e+00> : vector<32x8xf32>
    %126 = tpu.matmul %125, %113, %cst_33 {dimension_numbers = #tpu.dot_dimension_numbers<[1], [0], [0], [1], [0, 0, 1, 1], [], []>} : vector<32x32xf32>, vector<32x8xf32>, vector<32x8xf32> -> vector<32x8xf32>
    %127 = tpu.concatenate %78, %94, %110, %126 in 1 : vector<32x8xf32>, vector<32x8xf32>, vector<32x8xf32>, vector<32x8xf32> -> vector<32x32xf32>
    %cst_34 = arith.constant dense<0.000000e+00> : vector<32x32xf32>
    %128 = tpu.matmul %127, %14, %cst_34 {dimension_numbers = #tpu.dot_dimension_numbers<[1], [0], [0], [1], [0, 0, 1, 1], [], []>} : vector<32x32xf32>, vector<32x32xf32>, vector<32x32xf32> -> vector<32x32xf32>
    %129 = vector.broadcast %4 : vector<1x32xf32> to vector<32x32xf32>
    %130 = arith.addf %128, %129 : vector<32x32xf32>
    %131 = arith.addf %0, %130 : vector<32x32xf32>
    %cst_35 = arith.constant dense<0.000000e+00> : vector<32xf32>
    %132 = vector.multi_reduction <add>, %131, %cst_35 [1] : vector<32x32xf32> to vector<32xf32>
    %133 = vector.shape_cast %132 : vector<32xf32> to vector<32x1xf32>
    %cst_36 = arith.constant 3.125000e-02 : f32
    %134 = vector.broadcast %cst_36 : f32 to vector<32x1xf32>
    %135 = arith.mulf %133, %134 : vector<32x1xf32>
    %136 = arith.mulf %131, %131 : vector<32x32xf32>
    %cst_37 = arith.constant dense<0.000000e+00> : vector<32xf32>
    %137 = vector.multi_reduction <add>, %136, %cst_37 [1] : vector<32x32xf32> to vector<32xf32>
    %138 = vector.shape_cast %137 : vector<32xf32> to vector<32x1xf32>
    %cst_38 = arith.constant 3.125000e-02 : f32
    %139 = vector.broadcast %cst_38 : f32 to vector<32x1xf32>
    %140 = arith.mulf %138, %139 : vector<32x1xf32>
    %141 = arith.mulf %135, %135 : vector<32x1xf32>
    %142 = arith.subf %140, %141 : vector<32x1xf32>
    %143 = vector.broadcast %135 : vector<32x1xf32> to vector<32x32xf32>
    %144 = arith.subf %131, %143 : vector<32x32xf32>
    %cst_39 = arith.constant 9.99999974E-6 : f32
    %145 = vector.broadcast %cst_39 : f32 to vector<32x1xf32>
    %146 = arith.addf %142, %145 : vector<32x1xf32>
    %147 = math.rsqrt %146 : vector<32x1xf32>
    %148 = vector.broadcast %147 : vector<32x1xf32> to vector<32x32xf32>
    %149 = arith.mulf %144, %148 : vector<32x32xf32>
    %150 = vector.broadcast %6 : vector<1x32xf32> to vector<32x32xf32>
    %151 = arith.mulf %149, %150 : vector<32x32xf32>
    %152 = vector.broadcast %7 : vector<1x32xf32> to vector<32x32xf32>
    %153 = arith.addf %151, %152 : vector<32x32xf32>
    %cst_40 = arith.constant dense<0.000000e+00> : vector<32x64xf32>
    %154 = tpu.matmul %153, %15, %cst_40 {dimension_numbers = #tpu.dot_dimension_numbers<[1], [0], [0], [1], [0, 0, 1, 1], [], []>} : vector<32x32xf32>, vector<32x64xf32>, vector<32x64xf32> -> vector<32x64xf32>
    %155 = vector.broadcast %11 : vector<1x64xf32> to vector<32x64xf32>
    %156 = arith.addf %154, %155 : vector<32x64xf32>
    %cst_41 = arith.constant 0.000000e+00 : f32
    %157 = vector.broadcast %cst_41 : f32 to vector<32x64xf32>
    %158 = arith.maximumf %156, %157 : vector<32x64xf32>
    %c0_42 = arith.constant 0 : index
    %c0_43 = arith.constant 0 : index
    %159 = vector.load %arg3[%c0_42, %c0_43] : memref<64x32xf32, #tpu.memory_space<vmem>>, vector<64x32xf32>
    %cst_44 = arith.constant dense<0.000000e+00> : vector<32x32xf32>
    %160 = tpu.matmul %158, %159, %cst_44 {dimension_numbers = #tpu.dot_dimension_numbers<[1], [0], [0], [1], [0, 0, 1, 1], [], []>} : vector<32x64xf32>, vector<64x32xf32>, vector<32x32xf32> -> vector<32x32xf32>
    %161 = vector.broadcast %5 : vector<1x32xf32> to vector<32x32xf32>
    %162 = arith.addf %160, %161 : vector<32x32xf32>
    %163 = arith.addf %153, %162 : vector<32x32xf32>
    %cst_45 = arith.constant dense<0.000000e+00> : vector<32xf32>
    %164 = vector.multi_reduction <add>, %163, %cst_45 [1] : vector<32x32xf32> to vector<32xf32>
    %165 = vector.shape_cast %164 : vector<32xf32> to vector<32x1xf32>
    %cst_46 = arith.constant 3.125000e-02 : f32
    %166 = vector.broadcast %cst_46 : f32 to vector<32x1xf32>
    %167 = arith.mulf %165, %166 : vector<32x1xf32>
    %168 = arith.mulf %163, %163 : vector<32x32xf32>
    %cst_47 = arith.constant dense<0.000000e+00> : vector<32xf32>
    %169 = vector.multi_reduction <add>, %168, %cst_47 [1] : vector<32x32xf32> to vector<32xf32>
    %170 = vector.shape_cast %169 : vector<32xf32> to vector<32x1xf32>
    %cst_48 = arith.constant 3.125000e-02 : f32
    %171 = vector.broadcast %cst_48 : f32 to vector<32x1xf32>
    %172 = arith.mulf %170, %171 : vector<32x1xf32>
    %173 = arith.mulf %167, %167 : vector<32x1xf32>
    %174 = arith.subf %172, %173 : vector<32x1xf32>
    %175 = vector.broadcast %167 : vector<32x1xf32> to vector<32x32xf32>
    %176 = arith.subf %163, %175 : vector<32x32xf32>
    %cst_49 = arith.constant 9.99999974E-6 : f32
    %177 = vector.broadcast %cst_49 : f32 to vector<32x1xf32>
    %178 = arith.addf %174, %177 : vector<32x1xf32>
    %179 = math.rsqrt %178 : vector<32x1xf32>
    %180 = vector.broadcast %179 : vector<32x1xf32> to vector<32x32xf32>
    %181 = arith.mulf %176, %180 : vector<32x32xf32>
    %182 = vector.broadcast %8 : vector<1x32xf32> to vector<32x32xf32>
    %183 = arith.mulf %181, %182 : vector<32x32xf32>
    %184 = vector.broadcast %9 : vector<1x32xf32> to vector<32x32xf32>
    %185 = arith.addf %183, %184 : vector<32x32xf32>
    %c0_50 = arith.constant 0 : index
    %c0_51 = arith.constant 0 : index
    %186 = vector.load %arg5[%c0_50, %c0_51] : memref<32x32xf32, #tpu.memory_space<vmem>>, vector<32x32xf32>
    tpu.vector_store %arg5[%c0_50, %c0_51], %185 {strides = array<i32>} : memref<32x32xf32, #tpu.memory_space<vmem>>, vector<32x32xf32>,
    return
  }
}

</mosaic_0001>

<bundles_post_ra>
// kernel: tpu_custom_call.1
= control target key start
LH: loop header
LB: loop body
LE: loop exit
PB: predicated region body
PF: predicated region fallthrough
CT: control target
= control target key end

     0   :  { %10 = vsyncpa [#allocation3], 0  ;;  %s2211_s0 = inlined_call_operand.vmem [shape: f32[32,32], index: 0, kind: input, shape index: {}]   ;;  %s2212_s1 = inlined_call_operand.hbm [shape: f32[32,32], index: 1, kind: input, shape index: {}]   ;;  %s2213_s2 = inlined_call_operand.vmem [shape: f32[32,192], index: 2, kind: input, shape index: {}]   ;;  %s2214_s3 = inlined_call_operand.vmem [shape: f32[64,32], index: 3, kind: input, shape index: {}]   ;;  %s2215_s4 = inlined_call_operand.hbm [shape: f32[8,128], index: 4, kind: input, shape index: {}]   ;;  %s2216_s5 = inlined_call_operand.hbm [shape: f32[32,32], index: 5, kind: output, shape index: {}]  }
   0x1   :  { %11 = vsyncpa [#allocation6], 0 }
   0x2   :  { %12 = vsyncpa [#allocation4], 0  ;;  %s19_s20 = sshll.u32 %s2212_s1, 4  ;;  %s1629_s21 = smov [#allocation2]   ;;  %s20_s20 = int_to_ptr.hbm [resolvable:$true] %s19_s20 }
   0x3   :  { %s21_s22 = sshll.u32 %s1629_s21, 4  ;;  %s37_s25 = sshll.u32 %s2215_s4, 4  ;;  %s22_s22 = int_to_ptr.vmem [resolvable:$true] %s21_s22  ;;  %s38_s25 = int_to_ptr.hbm [resolvable:$true] %s37_s25 }
   0x4   :  { %s1630_s26 = smov 128   ;;  %s1631_s27 = smov 8  }
   0x5   :  { %27 = dma.hbm_to_vmem [thread:$0]  %s20_s20, 512, %s22_s22, [#allocation3], %s1630_s26, %s1630_s26, %s1631_s27  }
   0x6   :  { %s1632_s28 = smov [#allocation5]  }
   0x7   :  { %s39_s29 = sshll.u32 %s1632_s28, 4  ;;  %s40_s29 = int_to_ptr.vmem [resolvable:$true] %s39_s29 }
   0x8   :  { %42 = dma.hbm_to_vmem [thread:$0]  %s38_s25, 128, %s40_s29, [#allocation6]  }
   0x9   :  { %1623 = dma.done.wait [#allocation3], 512  }
   0xa   :  { %1624 = vsyncadd [#allocation3], 4294966784 }
   0xb   :  { %1625 = dma.done.wait [#allocation6], 128  }
   0xc   :  { %1626 = vsyncadd [#allocation6], 4294967168  ;;  %v1691_v0 = vld [vmem:[%s2213_s2 + $0x30] sm:$0xff]  ;;  %v1696_v1 = vld [vmem:[%s2213_s2 + $0x20] sm:$0xff]  ;;  %vm72_vm0 = vcmask 261120   ;;  %s1633_s19 = smov 96  }
   0xd   :  { %109 = vmatpush.msra.mxu0 %v1691_v0  ;;  %v51_v2 = vld [vmem:[%s2211_s0] sm:$0xff]  ;;  %1392 = vmatpush.msra.mxu2 %v1691_v0  ;;  %v1706_v4 = vld [vmem:[%s2213_s2 + $0x10] sm:$0xff]  ;;  %v52_v8 = vld [vmem:[%s2211_s0 + $0x8] sm:$0xff]  ;;  %s1634_s20 = smov 88   ;;  %s1635_s21 = smov 120   ;;  %vm239_vm1 = vcmask 64512  }
   0xe   :  { %v55_v3 = vld [vmem:[#allocation2] sm:$0xff]  ;;  %v53_v7 = vld [vmem:[%s2211_s0 + $0x10] sm:$0xff]  ;;  %v56_v9 = vld [vmem:[#allocation2 + $0x8] sm:$0xff]  ;;  %s1636_s22 = smov 80   ;;  %s1637_s23 = smov 72   ;;  %vm912_vm6 = vcmask 130048  }
   0xf   :  { %110 = vmatpush.msra.mxu0 %v1696_v1  ;;  %1393 = vmatpush.msra.mxu2 %v1696_v1  ;;  %v1713_v5 = vld [vmem:[%s2213_s2] sm:$0xff]  ;;  %v68_v6 = vadd.f32 %v55_v3, %v51_v2  ;;  %v69_v10 = vadd.f32 %v56_v9, %v52_v8  ;;  %v54_v11 = vld [vmem:[%s2211_s0 + $0x18] sm:$0xff]  ;;  %v57_v12 = vld [vmem:[#allocation2 + $0x10] sm:$0xff]  ;;  %s1638_s24 = smov 112   ;;  %s1639_s25 = smov 104   ;;  %vm917_vm7 = vcmask 195584  }
  0x10   :  { %v70_v13 = vadd.f32 %v57_v12, %v53_v7  ;;  %v58_v14 = vld [vmem:[#allocation2 + $0x18] sm:$0xff]  ;;  %v59_v17 = vld [vmem:[#allocation5] sm:$0xff]  ;;  %s1640_s28 = smov 64   ;;  %s1641_s29 = smov 56   ;;  %v1642_v12 = vmov -1e+30  }
  0x11   :  { %111 = vmatpush.msra.mxu0 %v1706_v4  ;;  %1394 = vmatpush.msra.mxu2 %v1706_v4  ;;  %v71_v15 = vadd.f32 %v58_v14, %v54_v11  ;;  %v1736_v18 = vperm.slane %v59_v17, 7  ;;  %v143_v26 = vperm.slane %v59_v17, 0  ;;  %s1643_s1 = smov 48   ;;  %s1644_s30 = smov 40  }
  0x12   :  { %s1645_s4 = smov 32   ;;  %s1646_s6 = smov 16  }
  0x13   :  { %112 = vmatpush.msra.mxu0 %v1713_v5  ;;  %1395 = vmatpush.msra.mxu2 %v1713_v5  ;;  %s1647_s7 = smov 24   ;;  %s1310_s16 = sshll.u32 %s2216_s5, 4  ;;  %s1311_s16 = int_to_ptr.hbm [resolvable:$true] %s1310_s16 }
  0x14   :  { %1324 = vmatmul.msk.f32.vlgmr.msra.gmra.mxu0 %vm72_vm0, %v68_v6  ;;  %1330 = vmatmul.msk.f32.vlgmr.msra.gmra.mxu2 %vm72_vm0, %v53_v7  ;;  %v152_v6 = vlaneseq }
  0x16   :  { %v153_v7 = vshrl.u32 %v152_v6, 7 }
  0x18   :  { %v161_v9 = vand.u32 1, %v153_v7 }
  0x1c   :  { %1325 = vmatmul.msk.f32.gmra.mxu0 %vm72_vm0, %v69_v10  ;;  %1331 = vmatmul.msk.f32.gmra.mxu2 %vm72_vm0, %v54_v11  ;;  %v154_v11 = vadd.s32 8, %v153_v7 }
  0x1e   :  { %v168_v14 = vand.u32 1, %v154_v11 }
  0x24   :  { %1326 = vmatmul.msk.f32.gmra.mxu0 %vm72_vm0, %v70_v13 }
  0x2c   :  { %1327 = vmatmul.msk.f32.gmra.mxu0 %vm72_vm0, %v71_v15 }
  0x34   :  { %1328 = vmatmul.msk.f32.gmra.mxu0 %vm72_vm0, %v51_v2 }
  0x3c   :  { %1329 = vmatmul.msk.f32.gmra.mxu0 %vm72_vm0, %v52_v8  ;;  %v206_v8 = vand.u32 127, %v152_v6 }
  0x3e   :  { %v1815_v10 = vand.u32 1, %v206_v8 }
  0x40   :  { %vm219_vm2 = vcmp.eq.s32.totalorder %v161_v9, %v1815_v10  ;;  %vm220_vm3 = vcmp.eq.s32.totalorder %v168_v14, %v1815_v10 }
  0x41   :  { %v1819_v13 = vsel %vm219_vm2, 0.0, %v1642_v12 }
  0x91   :  { %v114_v16 = vpop.f32.mrf.mxu0 }
  0x92   :  { %v139_v22 = vadd.f32 %v1736_v18, %v114_v16 }
  0x97   :  { %v132_v52 = vpop.f32.mrf.mxu2 }
  0x99   :  { %v117_v19 = vpop.f32.mrf.mxu0 }
  0x9a   :  { %v1739_v20 = vadd.f32 %v1736_v18, %v117_v19  ;;  %v1828_v19 = vsel %vm220_vm3, 0.0, %v1642_v12 }
  0x9c   :  { %233 = vrot.lane.b32.xlu1 %v1739_v20, %s1633_s19 }
  0x9f   :  { %v135_v57 = vpop.f32.mrf.mxu2 }
  0xa1   :  { %v120_v21 = vpop.f32.mrf.mxu0 }
  0xa2   :  { %v1744_v23 = vadd.f32 %v1736_v18, %v120_v21 }
  0xa4   :  { %231 = vrot.lane.b32.xlu1 %v139_v22, %s1633_s19  ;;  %398 = vrot.lane.b32.xlu2 %v1744_v23, %s1634_s20 }
  0xa9   :  { %v123_v24 = vpop.f32.mrf.mxu0 }
  0xaa   :  { %v1748_v25 = vadd.f32 %v1736_v18, %v123_v24 }
  0xac   :  { %394 = vrot.lane.b32.xlu1 %v139_v22, %s1634_s20  ;;  %400 = vrot.lane.b32.xlu2 %v1748_v25, %s1634_s20 }
  0xad   :  { %237 = vrot.lane.b32.xlu0 %v1748_v25, %s1633_s19 }
  0xb1   :  { %v126_v53 = vpop.f32.mrf.mxu0 }
  0xb4   :  { %390 = vrot.lane.b32.xlu1 %v1744_v23, %s1635_s21  ;;  %386 = vrot.lane.b32.xlu2 %v139_v22, %s1635_s21 }
  0xb5   :  { %235 = vrot.lane.b32.xlu0 %v1744_v23, %s1633_s19 }
  0xb9   :  { %v129_v58 = vpop.f32.mrf.mxu0 }
  0xbc   :  { %392 = vrot.lane.b32.xlu1 %v1748_v25, %s1635_s21  ;;  %556 = vrot.lane.b32.xlu2 %v1744_v23, %s1636_s22 }
  0xbd   :  { %396 = vrot.lane.b32.xlu0 %v1739_v20, %s1634_s20 }
  0xc4   :  { %554 = vrot.lane.b32.xlu1 %v1739_v20, %s1636_s22  ;;  %558 = vrot.lane.b32.xlu2 %v1748_v25, %s1636_s22 }
  0xc5   :  { %388 = vrot.lane.b32.xlu0 %v1739_v20, %s1635_s21 }
  0xcc   :  { %710 = vrot.lane.b32.xlu1 %v139_v22, %s1637_s23  ;;  %712 = vrot.lane.b32.xlu2 %v1739_v20, %s1637_s23 }
  0xcd   :  { %714 = vrot.lane.b32.xlu0 %v1744_v23, %s1637_s23 }
  0xd4   :  { %546 = vrot.lane.b32.xlu1 %v1739_v20, %s1638_s24  ;;  %544 = vrot.lane.b32.xlu2 %v139_v22, %s1638_s24 }
  0xd5   :  { %716 = vrot.lane.b32.xlu0 %v1748_v25, %s1637_s23 }
  0xdc   :  { %706 = vrot.lane.b32.xlu1 %v1744_v23, %s1639_s25  ;;  %704 = vrot.lane.b32.xlu2 %v1739_v20, %s1639_s25 }
  0xdd   :  { %552 = vrot.lane.b32.xlu0 %v139_v22, %s1636_s22 }
  0xe4   :  { %550 = vrot.lane.b32.xlu2 %v1748_v25, %s1638_s24 }
  0xe5   :  { %702 = vrot.lane.b32.xlu0 %v139_v22, %s1639_s25 }
  0xed   :  { %548 = vrot.lane.b32.xlu0 %v1744_v23, %s1638_s24 }
  0xf5   :  { %708 = vrot.lane.b32.xlu0 %v1748_v25, %s1639_s25 }
  0xfd   :  { %145 = vrot.lane.b32.xlu0 %v143_v26, %s1640_s28 }
  0xfe   :  { %v399_v27 = vpop.permute.xlu2 %398 }
 0x106   :  { %v401_v28 = vpop.permute.xlu2 %400 }
 0x107   :  { %1344 = vmatpush.xpose.msk.msra.mxu3 %vm239_vm1, %v401_v28 }
 0x10b   :  { %1345 = vmatpush.xpose.msk.msra.mxu3 %vm239_vm1, %v399_v27 }
 0x10e   :  { %v234_v29 = vpop.permute.xlu1 %233  ;;  %v387_v31 = vpop.permute.xlu2 %386 }
 0x116   :  { %v232_v30 = vpop.permute.xlu1 %231  ;;  %v557_v34 = vpop.permute.xlu2 %556 }
 0x11e   :  { %v395_v32 = vpop.permute.xlu1 %394  ;;  %v559_v39 = vpop.permute.xlu2 %558 }
 0x11f   :  { %v238_v33 = vpop.permute.xlu0 %237 }
 0x120   :  { %1332 = vmatpush.xpose.msk.msra.mxu1 %vm239_vm1, %v238_v33 }
 0x126   :  { %v391_v35 = vpop.permute.xlu1 %390  ;;  %v713_v44 = vpop.permute.xlu2 %712 }
 0x127   :  { %v236_v36 = vpop.permute.xlu0 %235 }
 0x128   :  { %1333 = vmatpush.xpose.msk.msra.mxu1 %vm239_vm1, %v236_v36 }
 0x12c   :  { %1334 = vmatpush.xpose.msk.msra.mxu1 %vm239_vm1, %v234_v29  ;;  %v155_v29 = vadd.s32 16, %v153_v7 }
 0x12e   :  { %v393_v37 = vpop.permute.xlu1 %392  ;;  %v545_v47 = vpop.permute.xlu2 %544 }
 0x12f   :  { %v397_v38 = vpop.permute.xlu0 %396 }
 0x130   :  { %1335 = vmatpush.xpose.msk.msra.mxu1 %vm239_vm1, %v232_v30  ;;  %1346 = vmatpush.xpose.msk.msra.mxu3 %vm239_vm1, %v397_v38  ;;  %v175_v30 = vand.u32 1, %v155_v29 }
 0x132   :  { %vm221_vm4 = vcmp.eq.s32.totalorder %v175_v30, %v1815_v10 }
 0x133   :  { %1336 = vmatmul.msk.f32.vlgmr.msra.gmra.mxu1 %vm239_vm1, %v139_v22 }
 0x134   :  { %1356 = vmatpush.xpose.msk.msrb.mxu1 %vm239_vm1, %v559_v39  ;;  %1347 = vmatpush.xpose.msk.msra.mxu3 %vm239_vm1, %v395_v32 }
 0x136   :  { %v555_v40 = vpop.permute.xlu1 %554  ;;  %v705_v50 = vpop.permute.xlu2 %704 }
 0x137   :  { %1348 = vmatmul.msk.f32.vlgmr.msra.gmra.mxu3 %vm239_vm1, %v387_v31  ;;  %v389_v41 = vpop.permute.xlu0 %388 }
 0x138   :  { %1357 = vmatpush.xpose.msk.msrb.mxu1 %vm239_vm1, %v557_v34  ;;  %v225_v34 = vsel %vm221_vm4, 0.0, %v1642_v12 }
 0x13b   :  { %1337 = vmatmul.msk.f32.gmra.mxu1 %vm239_vm1, %v1739_v20 }
 0x13c   :  { %1358 = vmatpush.xpose.msk.msrb.mxu1 %vm239_vm1, %v555_v40 }
 0x13e   :  { %v711_v46 = vpop.permute.xlu1 %710  ;;  %v551_v56 = vpop.permute.xlu2 %550 }
 0x13f   :  { %1349 = vmatmul.msk.f32.gmra.mxu3 %vm239_vm1, %v389_v41  ;;  %v715_v42 = vpop.permute.xlu0 %714 }
 0x143   :  { %1338 = vmatmul.msk.f32.gmra.mxu1 %vm239_vm1, %v1744_v23 }
 0x146   :  { %v547_v49 = vpop.permute.xlu1 %546 }
 0x147   :  { %1350 = vmatmul.msk.f32.gmra.mxu3 %vm239_vm1, %v391_v35  ;;  %v717_v43 = vpop.permute.xlu0 %716 }
 0x148   :  { %1368 = vmatpush.xpose.msk.msrb.mxu0 %vm239_vm1, %v717_v43 }
 0x14b   :  { %1339 = vmatmul.msk.f32.gmra.mxu1 %vm239_vm1, %v1748_v25 }
 0x14c   :  { %1369 = vmatpush.xpose.msk.msrb.mxu0 %vm239_vm1, %v715_v42 }
 0x14e   :  { %v707_v54 = vpop.permute.xlu1 %706 }
 0x14f   :  { %1351 = vmatmul.msk.f32.gmra.mxu3 %vm239_vm1, %v393_v37  ;;  %v553_v45 = vpop.permute.xlu0 %552 }
 0x150   :  { %1359 = vmatpush.xpose.msk.msrb.mxu1 %vm239_vm1, %v553_v45  ;;  %1370 = vmatpush.xpose.msk.msrb.mxu0 %vm239_vm1, %v713_v44 }
 0x153   :  { %1360 = vmatmul.msk.f32.vlgmr.msrb.gmra.mxu1 %vm239_vm1, %v545_v47 }
 0x154   :  { %1371 = vmatpush.xpose.msk.msrb.mxu0 %vm239_vm1, %v711_v46 }
 0x157   :  { %v703_v48 = vpop.permute.xlu0 %702 }
 0x158   :  { %1372 = vmatmul.msk.f32.vlgmr.msrb.gmra.mxu0 %vm239_vm1, %v703_v48  ;;  %v156_v48 = vadd.s32 24, %v153_v7 }
 0x15b   :  { %1361 = vmatmul.msk.f32.gmra.mxu1 %vm239_vm1, %v547_v49 }
 0x15f   :  { %v549_v51 = vpop.permute.xlu0 %548 }
 0x160   :  { %1373 = vmatmul.msk.f32.gmra.mxu0 %vm239_vm1, %v705_v50 }
 0x163   :  { %1362 = vmatmul.msk.f32.gmra.mxu1 %vm239_vm1, %v549_v51 }
 0x167   :  { %v709_v55 = vpop.permute.xlu0 %708 }
 0x168   :  { %1374 = vmatmul.msk.f32.gmra.mxu0 %vm239_vm1, %v707_v54 }
 0x16b   :  { %1363 = vmatmul.msk.f32.gmra.mxu1 %vm239_vm1, %v551_v56 }
 0x16f   :  { %v146_v59 = vpop.permute.xlu0 %145 }
 0x170   :  { %1375 = vmatmul.msk.f32.gmra.mxu0 %vm239_vm1, %v709_v55  ;;  %v150_v60 = vadd.f32 %v146_v59, %v132_v52  ;;  %v151_v61 = vadd.f32 %v146_v59, %v135_v57  ;;  %v148_v62 = vadd.f32 %v146_v59, %v126_v53  ;;  %v149_v63 = vadd.f32 %v146_v59, %v129_v58 }
 0x171   :  { %v182_v53 = vand.u32 1, %v156_v48 }
 0x172   :  { %v1805_v2 = vpack.i.bf16 %v150_v60, %v151_v61  ;;  %v1807_v3 = vpack.i.bf16 %v148_v62, %v149_v63 }
 0x173   :  { %vm222_vm5 = vcmp.eq.s32.totalorder %v182_v53, %v1815_v10 }
 0x174   :  { %1417 = vrot.lane.b32.xlu0 %v1805_v2, %s1640_s28  ;;  %1422 = vrot.lane.b32.xlu1 %v1805_v2, %s1641_s29  ;;  %v226_v61 = vsel %vm222_vm5, 0.0, %v1642_v12  ;;  %vm1148_vm5 = vcmask 523264  }
 0x175   :  { %1427 = vrot.lane.b32.xlu2 %v1807_v3, %s1640_s28 }
 0x1b0   :  { %v273_v15 = vpop.f32.mrf.mxu1 }
 0x1b1   :  { %v1822_v16 = vadd.f32 %v273_v15, %v1819_v13 }
 0x1b3   :  { %v285_v17 = vsel %vm72_vm0, %v1822_v16, -inf }
 0x1b4   :  { %286 = vmax.xlane.f32.xlu1 %v285_v17 }
 0x1b8   :  { %v276_v20 = vpop.f32.mrf.mxu1 }
 0x1b9   :  { %v1831_v21 = vadd.f32 %v276_v20, %v1828_v19 }
 0x1ba   :  { %v435_v22 = vpop.f32.mrf.mxu3 }
 0x1bb   :  { %v1834_v23 = vadd.f32 %v435_v22, %v1819_v13  ;;  %v288_v24 = vsel %vm72_vm0, %v1831_v21, -inf }
 0x1bc   :  { %289 = vmax.xlane.f32.xlu2 %v288_v24 }
 0x1bd   :  { %v447_v25 = vsel %vm72_vm0, %v1834_v23, -inf }
 0x1be   :  { %448 = vmax.xlane.f32.xlu1 %v447_v25 }
 0x1c0   :  { %v279_v35 = vpop.f32.mrf.mxu1 }
 0x1c1   :  { %v1852_v36 = vadd.f32 %v279_v35, %v225_v34 }
 0x1c2   :  { %v438_v26 = vpop.f32.mrf.mxu3 }
 0x1c3   :  { %v1841_v27 = vadd.f32 %v438_v26, %v1828_v19  ;;  %v291_v40 = vsel %vm72_vm0, %v1852_v36, -inf }
 0x1c5   :  { %v450_v28 = vsel %vm72_vm0, %v1841_v27, -inf }
 0x1c6   :  { %451 = vmax.xlane.f32.xlu2 %v450_v28 }
 0x1c8   :  { %v282_v41 = vpop.f32.mrf.mxu1 }
 0x1c9   :  { %v1884_v10 = vadd.f32 %v282_v41, %v226_v61 }
 0x1ca   :  { %v441_v45 = vpop.f32.mrf.mxu3 }
 0x1cb   :  { %v1867_v54 = vadd.f32 %v441_v45, %v225_v34  ;;  %v294_v12 = vsel %vm72_vm0, %v1884_v10, -inf }
 0x1cd   :  { %v453_v59 = vsel %vm72_vm0, %v1867_v54, -inf }
 0x1cf   :  { %v1428_v50 = vpop.permute.xlu2 %1427 }
 0x1d0   :  { %v1429_v52 = vunpack.i.l.bf16 %v1428_v50  ;;  %v593_v56 = vpop.f32.mrf.mxu1  ;;  %v1430_v57 = vunpack.i.h.bf16 %v1428_v50 }
 0x1d1   :  { %v1880_v7 = vadd.f32 %v593_v56, %v1819_v13 }
 0x1d2   :  { %v444_v60 = vpop.f32.mrf.mxu3 }
 0x1d3   :  { %v1873_v62 = vadd.f32 %v444_v60, %v226_v61  ;;  %v605_v8 = vsel %vm72_vm0, %v1880_v7, -inf }
 0x1d5   :  { %v751_v31 = vpop.f32.mrf.mxu0  ;;  %v456_v6 = vsel %vm72_vm0, %v1873_v62, -inf }
 0x1d6   :  { %v1847_v32 = vadd.f32 %v751_v31, %v1819_v13 }
 0x1d8   :  { %v763_v33 = vsel %vm72_vm0, %v1847_v32, -inf  ;;  %v596_v63 = vpop.f32.mrf.mxu1 }
 0x1d9   :  { %764 = vmax.xlane.f32.xlu0 %v763_v33  ;;  %v1897_v20 = vadd.f32 %v596_v63, %v1828_v19 }
 0x1db   :  { %v608_v22 = vsel %vm72_vm0, %v1897_v20, -inf }
 0x1dd   :  { %v754_v37 = vpop.f32.mrf.mxu0 }
 0x1de   :  { %v1855_v38 = vadd.f32 %v754_v37, %v1828_v19  ;;  %1437 = vrot.lane.b32.xlu2 %v1805_v2, %s1643_s1 }
 0x1e0   :  { %v766_v39 = vsel %vm72_vm0, %v1855_v38, -inf  ;;  %v599_v9 = vpop.f32.mrf.mxu1 }
 0x1e1   :  { %767 = vmax.xlane.f32.xlu1 %v766_v39  ;;  %292 = vmax.xlane.f32.xlu0 %v291_v40  ;;  %v1886_v11 = vadd.f32 %v599_v9, %v225_v34 }
 0x1e3   :  { %v611_v15 = vsel %vm72_vm0, %v1886_v11, -inf }
 0x1e5   :  { %v757_v42 = vpop.f32.mrf.mxu0 }
 0x1e6   :  { %v1863_v43 = vadd.f32 %v757_v42, %v225_v34  ;;  %v1418_v44 = vpop.permute.xlu0 %1417  ;;  %v1423_v51 = vpop.permute.xlu1 %1422 }
 0x1e7   :  { %v1419_v46 = vunpack.i.l.bf16 %v1418_v44  ;;  %v1420_v47 = vunpack.i.h.bf16 %v1418_v44  ;;  %v1424_v55 = vunpack.i.l.bf16 %v1423_v51  ;;  %v1425_v58 = vunpack.i.h.bf16 %v1423_v51 }
 0x1e8   :  { %v769_v49 = vsel %vm72_vm0, %v1863_v43, -inf  ;;  %v602_v24 = vpop.f32.mrf.mxu1 }
 0x1e9   :  { %770 = vmax.xlane.f32.xlu1 %v769_v49  ;;  %369 = vmatpush.msrb.mxu2 %v1419_v46  ;;  %v1901_v25 = vadd.f32 %v602_v24, %v226_v61 }
 0x1eb   :  { %370 = vmatpush.msrb.mxu2 %v1420_v47  ;;  %v614_v26 = vsel %vm72_vm0, %v1901_v25, -inf }
 0x1ed   :  { %371 = vmatpush.msrb.mxu2 %v1429_v52  ;;  %v760_v14 = vpop.f32.mrf.mxu0 }
 0x1ee   :  { %v1892_v13 = vadd.f32 %v760_v14, %v226_v61 }
 0x1ef   :  { %372 = vmatpush.msrb.mxu2 %v1430_v57 }
 0x1f0   :  { %v772_v17 = vsel %vm72_vm0, %v1892_v13, -inf }
 0x1f1   :  { %527 = vmatpush.msra.mxu2 %v1424_v55  ;;  %454 = vmax.xlane.f32.xlu1 %v453_v59 }
 0x1f3   :  { %528 = vmatpush.msra.mxu2 %v1425_v58 }
 0x1f5   :  { %1432 = vrot.lane.b32.xlu0 %v1807_v3, %s1641_s29 }
 0x1f9   :  { %457 = vmax.xlane.f32.xlu1 %v456_v6 }
 0x201   :  { %606 = vmax.xlane.f32.xlu1 %v605_v8 }
 0x207   :  { %295 = vmax.xlane.f32.xlu2 %v294_v12 }
 0x209   :  { %612 = vmax.xlane.f32.xlu1 %v611_v15 }
 0x20f   :  { %773 = vmax.xlane.f32.xlu2 %v772_v17 }
 0x217   :  { %609 = vmax.xlane.f32.xlu2 %v608_v22 }
 0x21f   :  { %615 = vmax.xlane.f32.xlu0 %v614_v26 }
 0x227   :  { %v287_v28 = vpop.xlane.xlu1 %286 }
 0x228   :  { %v297_v29 = vsub.f32 %v1822_v16, %v287_v28 }
 0x22a   :  { %v301_v30 = vmul.f32 1.442695, %v297_v29 }
 0x22c   :  { %1466 = vpow2.f32 %v301_v30 }
 0x22f   :  { %v290_v31 = vpop.xlane.xlu2 %289 }
 0x230   :  { %v298_v19 = vsub.f32 %v1831_v21, %v290_v31 }
 0x231   :  { %v449_v21 = vpop.xlane.xlu1 %448 }
 0x232   :  { %v1907_v33 = vpop.eup %1466  ;;  %v303_v34 = vmul.f32 1.442695, %v298_v19  ;;  %v459_v46 = vsub.f32 %v1834_v23, %v449_v21 }
 0x233   :  { %v309_v35 = vsel %vm72_vm0, %v1907_v33, 0.0 }
 0x234   :  { %1468 = vpow2.f32 %v303_v34  ;;  %310 = vadd.xlane.f32.xlu2 %v309_v35  ;;  %v463_v48 = vmul.f32 1.442695, %v459_v46 }
 0x239   :  { %v452_v37 = vpop.xlane.xlu2 %451 }
 0x23a   :  { %v1911_v39 = vpop.eup %1468  ;;  %v460_v57 = vsub.f32 %v1841_v27, %v452_v37 }
 0x23b   :  { %v312_v40 = vsel %vm72_vm0, %v1911_v39, 0.0 }
 0x23c   :  { %313 = vadd.xlane.f32.xlu1 %v312_v40  ;;  %v465_v59 = vmul.f32 1.442695, %v460_v57 }
 0x241   :  { %v1438_v16 = vpop.permute.xlu2 %1437 }
 0x242   :  { %v1439_v41 = vunpack.i.l.bf16 %v1438_v16  ;;  %v1440_v42 = vunpack.i.h.bf16 %v1438_v16 }
 0x244   :  { %685 = vmatpush.msrb.mxu3 %v1439_v41 }
 0x246   :  { %686 = vmatpush.msrb.mxu3 %v1440_v42 }
 0x24c   :  { %v765_v44 = vpop.xlane.xlu0 %764  ;;  %1442 = vrot.lane.b32.xlu2 %v1805_v2, %s1644_s30 }
 0x24d   :  { %v775_v45 = vsub.f32 %v1847_v32, %v765_v44 }
 0x24f   :  { %v779_v47 = vmul.f32 1.442695, %v775_v45 }
 0x251   :  { %1470 = vpow2.f32 %v779_v47 }
 0x252   :  { %1472 = vpow2.f32 %v463_v48 }
 0x254   :  { %v1919_v49 = vpop.xlane.xlu1 %767  ;;  %v293_v50 = vpop.xlane.xlu0 %292 }
 0x255   :  { %v299_v51 = vsub.f32 %v1852_v36, %v293_v50 }
 0x257   :  { %v1922_v52 = vpop.eup %1470  ;;  %v305_v53 = vmul.f32 1.442695, %v299_v51 }
 0x258   :  { %v787_v55 = vsel %vm72_vm0, %v1922_v52, 0.0  ;;  %v1926_v32 = vpop.eup %1472 }
 0x259   :  { %788 = vadd.xlane.f32.xlu0 %v787_v55  ;;  %1474 = vpow2.f32 %v305_v53  ;;  %v471_v56 = vsel %vm72_vm0, %v1926_v32, 0.0 }
 0x25a   :  { %1476 = vpow2.f32 %v465_v59 }
 0x25c   :  { %v771_v2 = vpop.xlane.xlu1 %770 }
 0x25d   :  { %v777_v16 = vsub.f32 %v1863_v43, %v771_v2 }
 0x25f   :  { %v1928_v23 = vpop.eup %1474  ;;  %v783_v44 = vmul.f32 1.442695, %v777_v16 }
 0x260   :  { %v315_v36 = vsel %vm72_vm0, %v1928_v23, 0.0  ;;  %v1936_v12 = vpop.eup %1476 }
 0x261   :  { %472 = vadd.xlane.f32.xlu0 %v471_v56  ;;  %316 = vadd.xlane.f32.xlu1 %v315_v36  ;;  %v474_v15 = vsel %vm72_vm0, %v1936_v12, 0.0 }
 0x264   :  { %v455_v58 = vpop.xlane.xlu1 %454 }
 0x265   :  { %v461_v6 = vsub.f32 %v1867_v54, %v455_v58 }
 0x267   :  { %v1433_v60 = vpop.permute.xlu0 %1432  ;;  %v467_v9 = vmul.f32 1.442695, %v461_v6 }
 0x268   :  { %v1434_v61 = vunpack.i.l.bf16 %v1433_v60  ;;  %v1435_v63 = vunpack.i.h.bf16 %v1433_v60 }
 0x269   :  { %1478 = vpow2.f32 %v467_v9  ;;  %v776_v9 = vsub.f32 %v1855_v38, %v1919_v49 }
 0x26a   :  { %529 = vmatpush.msra.mxu2 %v1434_v61 }
 0x26c   :  { %v458_v8 = vpop.xlane.xlu1 %457  ;;  %530 = vmatpush.msra.mxu2 %v1435_v63 }
 0x26d   :  { %v462_v28 = vsub.f32 %v1873_v62, %v458_v8 }
 0x26f   :  { %v1943_v22 = vpop.eup %1478  ;;  %v469_v30 = vmul.f32 1.442695, %v462_v28 }
 0x270   :  { %v477_v26 = vsel %vm72_vm0, %v1943_v22, 0.0 }
 0x274   :  { %v607_v14 = vpop.xlane.xlu1 %606 }
 0x275   :  { %v617_v27 = vsub.f32 %v1880_v7, %v607_v14  ;;  %1452 = vrot.lane.b32.xlu0 %v1807_v3, %s1644_s30  ;;  %475 = vadd.xlane.f32.xlu2 %v474_v15  ;;  %v781_v14 = vmul.f32 1.442695, %v776_v9 }
 0x277   :  { %v621_v17 = vmul.f32 1.442695, %v617_v27 }
 0x279   :  { %1480 = vpow2.f32 %v621_v17 }
 0x27a   :  { %v296_v54 = vpop.xlane.xlu2 %295 }
 0x27b   :  { %v300_v24 = vsub.f32 %v1884_v10, %v296_v54 }
 0x27c   :  { %v613_v35 = vpop.xlane.xlu1 %612 }
 0x27d   :  { %v307_v29 = vmul.f32 1.442695, %v300_v24  ;;  %478 = vadd.xlane.f32.xlu2 %v477_v26  ;;  %v619_v41 = vsub.f32 %v1886_v11, %v613_v35 }
 0x27f   :  { %1482 = vpow2.f32 %v307_v29  ;;  %v1949_v7 = vpop.eup %1480  ;;  %v625_v45 = vmul.f32 1.442695, %v619_v41 }
 0x280   :  { %v629_v19 = vsel %vm72_vm0, %v1949_v7, 0.0  ;;  %1484 = vpow2.f32 %v469_v30 }
 0x282   :  { %v774_v31 = vpop.xlane.xlu2 %773 }
 0x283   :  { %v778_v51 = vsub.f32 %v1892_v13, %v774_v31 }
 0x285   :  { %v1953_v34 = vpop.eup %1482  ;;  %630 = vadd.xlane.f32.xlu2 %v629_v19 }
 0x286   :  { %v318_v10 = vsel %vm72_vm0, %v1953_v34, 0.0  ;;  %v1957_v37 = vpop.eup %1484 }
 0x287   :  { %319 = vadd.xlane.f32.xlu1 %v318_v10  ;;  %v480_v21 = vsel %vm72_vm0, %v1957_v37, 0.0 }
 0x28a   :  { %v610_v62 = vpop.xlane.xlu2 %609 }
 0x28b   :  { %v618_v40 = vsub.f32 %v1897_v20, %v610_v62 }
 0x28d   :  { %v623_v42 = vmul.f32 1.442695, %v618_v40 }
 0x28f   :  { %1486 = vpow2.f32 %v623_v42  ;;  %481 = vadd.xlane.f32.xlu1 %v480_v21 }
 0x290   :  { %1488 = vpow2.f32 %v783_v44 }
 0x291   :  { %1490 = vpow2.f32 %v625_v45 }
 0x292   :  { %v616_v46 = vpop.xlane.xlu0 %615 }
 0x293   :  { %v620_v48 = vsub.f32 %v1901_v25, %v616_v46  ;;  %v785_v25 = vmul.f32 1.442695, %v778_v51 }
 0x295   :  { %v1964_v47 = vpop.eup %1486  ;;  %v627_v11 = vmul.f32 1.442695, %v620_v48 }
 0x296   :  { %v632_v43 = vsel %vm72_vm0, %v1964_v47, 0.0  ;;  %v1969_v20 = vpop.eup %1488 }
 0x297   :  { %633 = vadd.xlane.f32.xlu2 %v632_v43  ;;  %v1971_v50 = vpop.eup %1490  ;;  %1492 = vpow2.f32 %v627_v11  ;;  %v793_v55 = vsel %vm72_vm0, %v1969_v20, 0.0 }
 0x298   :  { %v635_v53 = vsel %vm72_vm0, %v1971_v50, 0.0  ;;  %1494 = vpow2.f32 %v785_v25 }
 0x29d   :  { %v1978_v2 = vpop.eup %1492 }
 0x29e   :  { %v638_v56 = vsel %vm72_vm0, %v1978_v2, 0.0  ;;  %v1984_v13 = vpop.eup %1494 }
 0x29f   :  { %636 = vadd.xlane.f32.xlu0 %v635_v53  ;;  %794 = vadd.xlane.f32.xlu2 %v793_v55  ;;  %v796_v58 = vsel %vm72_vm0, %v1984_v13, 0.0 }
 0x2a7   :  { %639 = vadd.xlane.f32.xlu2 %v638_v56  ;;  %v311_v36 = vpop.xlane.xlu2 %310 }
 0x2a8   :  { %1496 = vrcp.f32 %v311_v36  ;;  %1447 = vrot.lane.b32.xlu1 %v1807_v3, %s1643_s1 }
 0x2ae   :  { %v1497_v57 = vpop.eup %1496 }
 0x2af   :  { %v314_v59 = vpop.xlane.xlu1 %313  ;;  %797 = vadd.xlane.f32.xlu2 %v796_v58  ;;  %v1443_v60 = vpop.permute.xlu2 %1442  ;;  %v325_v61 = vmul.f32 %v1497_v57, %v1907_v33 }
 0x2b0   :  { %1498 = vrcp.f32 %v314_v59  ;;  %v1444_v63 = vunpack.i.l.bf16 %v1443_v60  ;;  %v1445_v6 = vunpack.i.h.bf16 %v1443_v60 }
 0x2b1   :  { %1340 = vmatmul.msk.f32.vlgmr.msrb.gmra.mxu2 %vm72_vm0, %v325_v61  ;;  %1500 = vpow2.f32 %v781_v14 }
 0x2b2   :  { %843 = vmatpush.msrb.mxu2 %v1444_v63 }
 0x2b4   :  { %844 = vmatpush.msrb.mxu2 %v1445_v6  ;;  %v1461_v6 = vpack.i.bf16 %v1713_v5, %v1706_v4 }
 0x2b6   :  { %v1499_v8 = vpop.eup %1498  ;;  %1462 = vrot.lane.b32.xlu0 %v1461_v6, %s1645_s4 }
 0x2b7   :  { %v326_v3 = vmul.f32 %v1499_v8, %v1911_v39  ;;  %v1994_v15 = vpop.eup %1500 }
 0x2b8   :  { %v790_v33 = vsel %vm72_vm0, %v1994_v15, 0.0 }
 0x2b9   :  { %1341 = vmatmul.msk.f32.gmra.mxu2 %vm72_vm0, %v326_v3 }
 0x2cc   :  { %v789_v27 = vpop.xlane.xlu0 %788 }
 0x2d2   :  { %791 = vadd.xlane.f32.xlu1 %v790_v33 }
 0x2d4   :  { %v317_v17 = vpop.xlane.xlu1 %316  ;;  %v473_v39 = vpop.xlane.xlu0 %472 }
 0x2d5   :  { %1502 = vrcp.f32 %v317_v17 }
 0x2db   :  { %v1503_v54 = vpop.eup %1502 }
 0x2dc   :  { %v327_v24 = vmul.f32 %v1503_v54, %v1928_v23 }
 0x2de   :  { %1342 = vmatmul.msk.f32.gmra.mxu2 %vm72_vm0, %v327_v24 }
 0x2e7   :  { %v1453_v26 = vpop.permute.xlu0 %1452 }
 0x2e8   :  { %v1454_v28 = vunpack.i.l.bf16 %v1453_v26  ;;  %v1455_v38 = vunpack.i.h.bf16 %v1453_v26  ;;  %v476_v49 = vpop.xlane.xlu2 %475 }
 0x2ea   :  { %845 = vmatpush.msrb.mxu2 %v1454_v28 }
 0x2ec   :  { %846 = vmatpush.msrb.mxu2 %v1455_v38 }
 0x2f0   :  { %v479_v19 = vpop.xlane.xlu2 %478 }
 0x2f8   :  { %v631_v35 = vpop.xlane.xlu2 %630 }
 0x2fa   :  { %v320_v29 = vpop.xlane.xlu1 %319 }
 0x2fb   :  { %1504 = vrcp.f32 %v320_v29 }
 0x2fc   :  { %1506 = vrcp.f32 %v473_v39 }
 0x2fd   :  { %1508 = vrcp.f32 %v476_v49 }
 0x2fe   :  { %1510 = vrcp.f32 %v479_v19 }
 0x2ff   :  { %1512 = vrcp.f32 %v631_v35 }
 0x301   :  { %v1505_v30 = vpop.eup %1504 }
 0x302   :  { %v328_v31 = vmul.f32 %v1505_v30, %v1953_v34  ;;  %v1507_v10 = vpop.eup %1506  ;;  %v482_v40 = vpop.xlane.xlu1 %481 }
 0x303   :  { %v487_v23 = vmul.f32 %v1507_v10, %v1926_v32  ;;  %v1509_v62 = vpop.eup %1508  ;;  %1514 = vrcp.f32 %v482_v40 }
 0x304   :  { %1343 = vmatmul.msk.f32.gmra.mxu2 %vm72_vm0, %v328_v31  ;;  %v488_v16 = vmul.f32 %v1509_v62, %v1936_v12  ;;  %v1511_v34 = vpop.eup %1510 }
 0x305   :  { %v489_v21 = vmul.f32 %v1511_v34, %v1943_v22  ;;  %v1513_v44 = vpop.eup %1512 }
 0x306   :  { %v645_v46 = vmul.f32 %v1513_v44, %v1949_v7 }
 0x309   :  { %v1515_v48 = vpop.eup %1514 }
 0x30a   :  { %v634_v41 = vpop.xlane.xlu2 %633  ;;  %v490_v11 = vmul.f32 %v1515_v48, %v1957_v37 }
 0x30b   :  { %1516 = vrcp.f32 %v634_v41 }
 0x30c   :  { %1352 = vmatmul.msk.f32.vlgmr.msra.gmra.mxu2 %vm72_vm0, %v487_v23  ;;  %1518 = vrcp.f32 %v789_v27 }
 0x311   :  { %v1517_v51 = vpop.eup %1516 }
 0x312   :  { %v795_v12 = vpop.xlane.xlu2 %794  ;;  %v637_v43 = vpop.xlane.xlu0 %636  ;;  %v646_v22 = vmul.f32 %v1517_v51, %v1964_v47 }
 0x313   :  { %1520 = vrcp.f32 %v637_v43  ;;  %v1519_v53 = vpop.eup %1518 }
 0x314   :  { %1353 = vmatmul.msk.f32.gmra.mxu2 %vm72_vm0, %v488_v16  ;;  %v803_v7 = vmul.f32 %v1519_v53, %v1922_v52  ;;  %v2053_v53 = vld [vmem:[#allocation5] sm:$0xff] }
 0x319   :  { %v1521_v25 = vpop.eup %1520 }
 0x31a   :  { %v1448_v42 = vpop.permute.xlu1 %1447  ;;  %v640_v55 = vpop.xlane.xlu2 %639  ;;  %v647_v56 = vmul.f32 %v1521_v25, %v1971_v50 }
 0x31b   :  { %v1449_v45 = vunpack.i.l.bf16 %v1448_v42  ;;  %v1450_v32 = vunpack.i.h.bf16 %v1448_v42  ;;  %1522 = vrcp.f32 %v640_v55 }
 0x31c   :  { %1354 = vmatmul.msk.f32.gmra.mxu2 %vm72_vm0, %v489_v21 }
 0x31d   :  { %687 = vmatpush.msrb.mxu3 %v1449_v45 }
 0x31f   :  { %688 = vmatpush.msrb.mxu3 %v1450_v32 }
 0x320   :  { %1364 = vmatmul.msk.f32.vlgmr.msrb.gmra.mxu3 %vm72_vm0, %v645_v46 }
 0x321   :  { %v1523_v37 = vpop.eup %1522 }
 0x322   :  { %v648_v36 = vmul.f32 %v1523_v37, %v1978_v2  ;;  %v798_v58 = vpop.xlane.xlu2 %797 }
 0x324   :  { %1355 = vmatmul.msk.f32.gmra.mxu2 %vm72_vm0, %v490_v11 }
 0x328   :  { %1365 = vmatmul.msk.f32.gmra.mxu3 %vm72_vm0, %v646_v22  ;;  %v1463_v28 = vpop.permute.xlu0 %1462 }
 0x329   :  { %v1464_v38 = vunpack.i.l.bf16 %v1463_v28  ;;  %v1465_v49 = vunpack.i.h.bf16 %v1463_v28 }
 0x32c   :  { %1376 = vmatmul.msk.f32.vlgmr.msrb.gmra.mxu2 %vm72_vm0, %v803_v7  ;;  %v922_v7 = vperm.slane %v2053_v53, 1 }
 0x330   :  { %1366 = vmatmul.msk.f32.gmra.mxu3 %vm72_vm0, %v647_v56  ;;  %v1547_v56 = vld [vmem:[%s2211_s0] sm:$0xff] }
 0x334   :  { %v374_v61 = vpop.f32.mrf.mxu2 }
 0x338   :  { %1367 = vmatmul.msk.f32.gmra.mxu3 %vm72_vm0, %v648_v36 }
 0x33c   :  { %v377_v63 = vpop.f32.mrf.mxu2 }
 0x345   :  { %v792_v47 = vpop.xlane.xlu1 %791 }
 0x346   :  { %1524 = vrcp.f32 %v792_v47 }
 0x347   :  { %1526 = vrcp.f32 %v795_v12 }
 0x348   :  { %1528 = vrcp.f32 %v798_v58 }
 0x34c   :  { %v1525_v57 = vpop.eup %1524 }
 0x34d   :  { %v804_v52 = vmul.f32 %v1525_v57, %v1994_v15  ;;  %v1527_v59 = vpop.eup %1526 }
 0x34e   :  { %v805_v50 = vmul.f32 %v1527_v59, %v1969_v20  ;;  %v1529_v60 = vpop.eup %1528  ;;  %v1456_v20 = vpack.i.bf16 %v1696_v1, %v1691_v0  ;;  %v1548_v59 = vld [vmem:[%s2211_s0 + $0x8] sm:$0xff] }
 0x34f   :  { %1377 = vmatmul.msk.f32.gmra.mxu2 %vm72_vm0, %v804_v52  ;;  %v806_v2 = vmul.f32 %v1529_v60, %v1984_v13 }
 0x350   :  { %1457 = vrot.lane.b32.xlu1 %v1456_v20, %s1645_s4 }
 0x357   :  { %1378 = vmatmul.msk.f32.gmra.mxu2 %vm72_vm0, %v805_v50 }
 0x35f   :  { %1379 = vmatmul.msk.f32.gmra.mxu2 %vm72_vm0, %v806_v2 }
 0x361   :  { %v380_v8 = vpop.f32.mrf.mxu2 }
 0x387   :  { %v2028_v3 = vpop.f32.mrf.mxu2 }
 0x38f   :  { %v532_v9 = vpop.f32.mrf.mxu2 }
 0x390   :  { %864 = vrot.lane.b32.xlu2 %v532_v9, %s1631_s27 }
 0x397   :  { %v535_v13 = vpop.f32.mrf.mxu2 }
 0x398   :  { %866 = vrot.lane.b32.xlu2 %v535_v13, %s1631_s27 }
 0x39f   :  { %v538_v14 = vpop.f32.mrf.mxu2 }
 0x3a0   :  { %868 = vrot.lane.b32.xlu2 %v538_v14, %s1631_s27 }
 0x3a3   :  { %v690_v15 = vpop.f32.mrf.mxu3 }
 0x3a4   :  { %880 = vrot.lane.b32.xlu0 %v690_v15, %s1646_s6 }
 0x3a7   :  { %v541_v4 = vpop.f32.mrf.mxu2 }
 0x3a8   :  { %870 = vrot.lane.b32.xlu2 %v541_v4, %s1631_s27  ;;  %v1550_v4 = vld [vmem:[%s2211_s0 + $0x18] sm:$0xff] }
 0x3ab   :  { %v693_v5 = vpop.f32.mrf.mxu3 }
 0x3ac   :  { %882 = vrot.lane.b32.xlu0 %v693_v5, %s1646_s6 }
 0x3af   :  { %v848_v33 = vpop.f32.mrf.mxu2 }
 0x3b0   :  { %896 = vrot.lane.b32.xlu1 %v848_v33, %s1647_s7 }
 0x3b3   :  { %v696_v0 = vpop.f32.mrf.mxu3 }
 0x3b4   :  { %884 = vrot.lane.b32.xlu0 %v696_v0, %s1646_s6 }
 0x3bb   :  { %v699_v1 = vpop.f32.mrf.mxu3 }
 0x3bc   :  { %886 = vrot.lane.b32.xlu0 %v699_v1, %s1646_s6 }
 0x3c2   :  { %v1458_v24 = vpop.permute.xlu1 %1457 }
 0x3c3   :  { %v1460_v39 = vunpack.i.h.bf16 %v1458_v24  ;;  %v1459_v26 = vunpack.i.l.bf16 %v1458_v24  ;;  %v61_v24 = vld [vmem:[%s2213_s2 + $0x8] sm:$0xff] }
 0x3c5   :  { %963 = vmatpush.msra.mxu1 %v1459_v26 }
 0x3c7   :  { %964 = vmatpush.msra.mxu1 %v1460_v39 }
 0x3c9   :  { %965 = vmatpush.msra.mxu1 %v1464_v38 }
 0x3cb   :  { %966 = vmatpush.msra.mxu1 %v1465_v49 }
 0x3d2   :  { %v851_v27 = vpop.f32.mrf.mxu2 }
 0x3d3   :  { %898 = vrot.lane.b32.xlu1 %v851_v27, %s1647_s7  ;;  %v67_v27 = vld [vmem:[%s2213_s2 + $0x38] sm:$0xff] }
 0x3d4   :  { %1118 = vmatpush.msra.mxu3 %v67_v27 }
 0x3da   :  { %v854_v17 = vpop.f32.mrf.mxu2 }
 0x3db   :  { %900 = vrot.lane.b32.xlu1 %v854_v17, %s1647_s7  ;;  %v65_v17 = vld [vmem:[%s2213_s2 + $0x28] sm:$0xff] }
 0x3dc   :  { %1119 = vmatpush.msra.mxu3 %v65_v17 }
 0x3e2   :  { %v857_v54 = vpop.f32.mrf.mxu2 }
 0x3e3   :  { %902 = vrot.lane.b32.xlu1 %v857_v54, %s1647_s7  ;;  %v63_v54 = vld [vmem:[%s2213_s2 + $0x18] sm:$0xff] }
 0x3e4   :  { %1120 = vmatpush.msra.mxu3 %v63_v54 }
 0x3e6   :  { %1121 = vmatpush.msra.mxu3 %v61_v24 }
 0x3ea   :  { %v865_v29 = vpop.permute.xlu2 %864 }
 0x3eb   :  { %v908_v31 = vsel %vm239_vm1, %v374_v61, %v865_v29 }
 0x3f2   :  { %v867_v35 = vpop.permute.xlu2 %866 }
 0x3f3   :  { %v909_v40 = vsel %vm239_vm1, %v377_v63, %v867_v35 }
 0x3fa   :  { %v869_v42 = vpop.permute.xlu2 %868 }
 0x3fb   :  { %v910_v44 = vsel %vm239_vm1, %v380_v8, %v869_v42  ;;  %v1549_v8 = vld [vmem:[%s2211_s0 + $0x10] sm:$0xff] }
 0x402   :  { %v871_v48 = vpop.permute.xlu2 %870 }
 0x403   :  { %v911_v43 = vsel %vm239_vm1, %v2028_v3, %v871_v48 }
 0x416   :  { %v881_v30 = vpop.permute.xlu0 %880 }
 0x417   :  { %v913_v19 = vsel %vm912_vm6, %v908_v31, %v881_v30 }
 0x41e   :  { %v883_v62 = vpop.permute.xlu0 %882 }
 0x41f   :  { %v914_v16 = vsel %vm912_vm6, %v909_v40, %v883_v62  ;;  %v2112_v40 = vperm.slane %v2053_v53, 3 }
 0x422   :  { %v897_v10 = vpop.permute.xlu1 %896 }
 0x423   :  { %v918_v23 = vsel %vm917_vm7, %v913_v19, %v897_v10 }
 0x424   :  { %1380 = vmatmul.msk.f32.vlgmr.msra.gmra.mxu1 %vm72_vm0, %v918_v23 }
 0x426   :  { %v885_v21 = vpop.permute.xlu0 %884 }
 0x427   :  { %v915_v45 = vsel %vm912_vm6, %v910_v44, %v885_v21 }
 0x42e   :  { %v887_v12 = vpop.permute.xlu0 %886 }
 0x42f   :  { %v916_v11 = vsel %vm912_vm6, %v911_v43, %v887_v12 }
 0x445   :  { %v899_v41 = vpop.permute.xlu1 %898 }
 0x446   :  { %v919_v34 = vsel %vm917_vm7, %v914_v16, %v899_v41 }
 0x447   :  { %1381 = vmatmul.msk.f32.gmra.mxu1 %vm72_vm0, %v919_v34  ;;  %v2115_v34 = vperm.slane %v2053_v53, 4 }
 0x44d   :  { %v901_v32 = vpop.permute.xlu1 %900 }
 0x44e   :  { %v920_v46 = vsel %vm917_vm7, %v915_v45, %v901_v32 }
 0x44f   :  { %1382 = vmatmul.msk.f32.gmra.mxu1 %vm72_vm0, %v920_v46 }
 0x455   :  { %v903_v51 = vpop.permute.xlu1 %902 }
 0x456   :  { %v921_v22 = vsel %vm917_vm7, %v916_v11, %v903_v51 }
 0x457   :  { %1383 = vmatmul.msk.f32.gmra.mxu1 %vm72_vm0, %v921_v22 }
 0x4a1   :  { %v968_v55 = vpop.f32.mrf.mxu1 }
 0x4a2   :  { %v969_v25 = vadd.f32 %v968_v55, %v922_v7 }
 0x4a4   :  { %v2059_v37 = vadd.f32 %v1547_v56, %v969_v25 }
 0x4a6   :  { %v984_v36 = vsel %vm72_vm0, %v2059_v37, 0.0  ;;  %v1000_v47 = vmul.f32 %v2059_v37, %v2059_v37 }
 0x4a7   :  { %985 = vadd.xlane.f32.xlu2 %v984_v36 }
 0x4a8   :  { %v1004_v57 = vsel %vm72_vm0, %v1000_v47, 0.0 }
 0x4a9   :  { %1005 = vadd.xlane.f32.xlu0 %v1004_v57 }
 0x4c4   :  { %v971_v52 = vpop.f32.mrf.mxu1 }
 0x4c5   :  { %v972_v58 = vadd.f32 %v971_v52, %v922_v7  ;;  %v1146_v52 = vld [vmem:[%s2214_s3 + $0x38] sm:$0xff] }
 0x4c6   :  { %1169 = vmatpush.msra.mxu0 %v1146_v52 }
 0x4c7   :  { %v2069_v50 = vadd.f32 %v1548_v59, %v972_v58  ;;  %v1145_v58 = vld [vmem:[%s2214_s3 + $0x30] sm:$0xff] }
 0x4c8   :  { %1170 = vmatpush.msra.mxu0 %v1145_v58 }
 0x4c9   :  { %v987_v60 = vsel %vm72_vm0, %v2069_v50, 0.0  ;;  %v1001_v2 = vmul.f32 %v2069_v50, %v2069_v50 }
 0x4ca   :  { %988 = vadd.xlane.f32.xlu1 %v987_v60 }
 0x4cb   :  { %v1007_v61 = vsel %vm72_vm0, %v1001_v2, 0.0 }
 0x4cc   :  { %1008 = vadd.xlane.f32.xlu2 %v1007_v61  ;;  %v974_v63 = vpop.f32.mrf.mxu1 }
 0x4cd   :  { %v975_v6 = vadd.f32 %v974_v63, %v922_v7  ;;  %v1144_v63 = vld [vmem:[%s2214_s3 + $0x28] sm:$0xff] }
 0x4ce   :  { %1171 = vmatpush.msra.mxu0 %v1144_v63 }
 0x4cf   :  { %v2079_v3 = vadd.f32 %v1549_v8, %v975_v6 }
 0x4d1   :  { %v990_v20 = vsel %vm72_vm0, %v2079_v3, 0.0  ;;  %v1002_v9 = vmul.f32 %v2079_v3, %v2079_v3 }
 0x4d2   :  { %991 = vadd.xlane.f32.xlu0 %v990_v20  ;;  %v1143_v20 = vld [vmem:[%s2214_s3 + $0x20] sm:$0xff] }
 0x4d3   :  { %v1010_v13 = vsel %vm72_vm0, %v1002_v9, 0.0  ;;  %1172 = vmatpush.msra.mxu0 %v1143_v20 }
 0x4d4   :  { %1011 = vadd.xlane.f32.xlu1 %v1010_v13  ;;  %v977_v14 = vpop.f32.mrf.mxu1 }
 0x4d5   :  { %v978_v15 = vadd.f32 %v977_v14, %v922_v7 }
 0x4d7   :  { %v2089_v5 = vadd.f32 %v1550_v4, %v978_v15  ;;  %v1142_v15 = vld [vmem:[%s2214_s3 + $0x18] sm:$0xff] }
 0x4d8   :  { %1173 = vmatpush.msra.mxu0 %v1142_v15 }
 0x4d9   :  { %v993_v33 = vsel %vm72_vm0, %v2089_v5, 0.0  ;;  %v1003_v0 = vmul.f32 %v2089_v5, %v2089_v5 }
 0x4da   :  { %994 = vadd.xlane.f32.xlu2 %v993_v33 }
 0x4db   :  { %v1013_v1 = vsel %vm72_vm0, %v1003_v0, 0.0 }
 0x4dc   :  { %1014 = vadd.xlane.f32.xlu0 %v1013_v1 }
 0x4ed   :  { %1091 = vrot.lane.b32.xlu1 %v1736_v18, %s1640_s28 }
 0x51a   :  { %v986_v18 = vpop.xlane.xlu2 %985 }
 0x51b   :  { %v996_v39 = vmul.f32 0.03125, %v986_v18 }
 0x51c   :  { %v1006_v26 = vpop.xlane.xlu0 %1005 }
 0x51d   :  { %v1020_v28 = vmul.f32 %v996_v39, %v996_v39  ;;  %v1016_v38 = vmul.f32 0.03125, %v1006_v26  ;;  %v1028_v62 = vsub.f32 %v2059_v37, %v996_v39 }
 0x51f   :  { %v1024_v49 = vsub.f32 %v1016_v38, %v1020_v28 }
 0x521   :  { %v1032_v29 = vadd.f32 1e-05, %v1024_v49 }
 0x523   :  { %1530 = vrsqrt.f32 %v1032_v29  ;;  %vm1042_vm9 = vweird.f32 %v1032_v29 }
 0x529   :  { %v1531_v30 = vpop.eup %1530 }
 0x52a   :  { %v1037_v31 = vmul.f32 %v1531_v30, %v1032_v29  ;;  %vm1043_vm8 = vweird.f32 %v1531_v30 }
 0x52b   :  { %vm1044_vm10 = vmor %vm1042_vm9, %vm1043_vm8 }
 0x52c   :  { %v1038_v19 = vmul.f32 %v1531_v30, %v1037_v31 }
 0x52e   :  { %v1039_v10 = vmul.f32 0.5, %v1038_v19 }
 0x530   :  { %v1040_v23 = vsub.f32 1.5, %v1039_v10 }
 0x532   :  { %v1041_v35 = vmul.f32 %v1531_v30, %v1040_v23 }
 0x534   :  { %v1045_v16 = vsel %vm1044_vm10, %v1531_v30, %v1041_v35 }
 0x535   :  { %v1076_v41 = vmul.f32 %v1045_v16, %v1028_v62 }
 0x537   :  { %v1081_v42 = vmul.f32 %v2112_v40, %v1076_v41 }
 0x539   :  { %v2119_v21 = vadd.f32 %v2115_v34, %v1081_v42 }
 0x53b   :  { %1384 = vmatmul.msk.f32.vlgmr.msra.gmra.mxu3 %vm72_vm0, %v2119_v21 }
 0x53d   :  { %v989_v44 = vpop.xlane.xlu1 %988 }
 0x53e   :  { %v997_v45 = vmul.f32 0.03125, %v989_v44  ;;  %v1141_v44 = vld [vmem:[%s2214_s3 + $0x10] sm:$0xff] }
 0x53f   :  { %v1009_v32 = vpop.xlane.xlu2 %1008  ;;  %1174 = vmatpush.msra.mxu0 %v1141_v44 }
 0x540   :  { %v1021_v46 = vmul.f32 %v997_v45, %v997_v45  ;;  %v1017_v48 = vmul.f32 0.03125, %v1009_v32  ;;  %v1029_v0 = vsub.f32 %v2069_v50, %v997_v45  ;;  %v1139_v45 = vld [vmem:[%s2214_s3] sm:$0xff] }
 0x542   :  { %v1025_v12 = vsub.f32 %v1017_v48, %v1021_v46 }
 0x544   :  { %v1033_v43 = vadd.f32 1e-05, %v1025_v12 }
 0x545   :  { %v992_v11 = vpop.xlane.xlu0 %991 }
 0x546   :  { %1532 = vrsqrt.f32 %v1033_v43  ;;  %v998_v51 = vmul.f32 0.03125, %v992_v11  ;;  %vm1052_vm12 = vweird.f32 %v1033_v43 }
 0x547   :  { %v1012_v22 = vpop.xlane.xlu1 %1011 }
 0x548   :  { %v1022_v7 = vmul.f32 %v998_v51, %v998_v51  ;;  %v1018_v55 = vmul.f32 0.03125, %v1012_v22  ;;  %v1030_v49 = vsub.f32 %v2079_v3, %v998_v51 }
 0x54a   :  { %v1026_v25 = vsub.f32 %v1018_v55, %v1022_v7 }
 0x54c   :  { %v1533_v56 = vpop.eup %1532  ;;  %v1034_v37 = vadd.f32 1e-05, %v1026_v25 }
 0x54d   :  { %v1047_v36 = vmul.f32 %v1533_v56, %v1033_v43  ;;  %v995_v47 = vpop.xlane.xlu2 %994  ;;  %vm1053_vm11 = vweird.f32 %v1533_v56 }
 0x54e   :  { %1534 = vrsqrt.f32 %v1034_v37  ;;  %v999_v57 = vmul.f32 0.03125, %v995_v47  ;;  %vm1054_vm13 = vmor %vm1052_vm12, %vm1053_vm11  ;;  %vm1062_vm15 = vweird.f32 %v1034_v37 }
 0x54f   :  { %v1048_v59 = vmul.f32 %v1533_v56, %v1047_v36  ;;  %v1015_v60 = vpop.xlane.xlu0 %1014 }
 0x550   :  { %v1023_v2 = vmul.f32 %v999_v57, %v999_v57  ;;  %v1019_v61 = vmul.f32 0.03125, %v1015_v60  ;;  %v1031_v62 = vsub.f32 %v2089_v5, %v999_v57  ;;  %v1140_v5 = vld [vmem:[%s2214_s3 + $0x8] sm:$0xff]  ;;  %s1648_s3 = smov [#allocation7]  }
 0x551   :  { %v1049_v6 = vmul.f32 0.5, %v1048_v59  ;;  %1175 = vmatpush.msra.mxu0 %v1140_v5  ;;  %s1308_s13 = sshll.u32 %s1648_s3, 4  ;;  %s1309_s13 = int_to_ptr.vmem [resolvable:$true] %s1308_s13 }
 0x552   :  { %v1027_v8 = vsub.f32 %v1019_v61, %v1023_v2 }
 0x553   :  { %v1050_v9 = vsub.f32 1.5, %v1049_v6  ;;  %1176 = vmatpush.msra.mxu0 %v1139_v45 }
 0x554   :  { %v1535_v13 = vpop.eup %1534  ;;  %v1035_v14 = vadd.f32 1e-05, %v1027_v8 }
 0x555   :  { %v1051_v4 = vmul.f32 %v1533_v56, %v1050_v9  ;;  %v1057_v33 = vmul.f32 %v1535_v13, %v1034_v37  ;;  %vm1063_vm14 = vweird.f32 %v1535_v13 }
 0x556   :  { %1536 = vrsqrt.f32 %v1035_v14  ;;  %vm1064_vm1 = vmor %vm1062_vm15, %vm1063_vm14  ;;  %vm1072_vm3 = vweird.f32 %v1035_v14 }
 0x557   :  { %v1058_v1 = vmul.f32 %v1535_v13, %v1057_v33  ;;  %v1055_v27 = vsel %vm1054_vm13, %v1533_v56, %v1051_v4  ;;  %v1147_v56 = vperm.slane %v2053_v53, 2 }
 0x558   :  { %v1077_v17 = vmul.f32 %v1055_v27, %v1029_v0 }
 0x559   :  { %v1059_v54 = vmul.f32 0.5, %v1058_v1 }
 0x55a   :  { %v1082_v24 = vmul.f32 %v2112_v40, %v1077_v17 }
 0x55b   :  { %v1060_v18 = vsub.f32 1.5, %v1059_v54 }
 0x55c   :  { %v1537_v39 = vpop.eup %1536  ;;  %v1087_v26 = vadd.f32 %v2115_v34, %v1082_v24 }
 0x55d   :  { %v1061_v28 = vmul.f32 %v1535_v13, %v1060_v18  ;;  %v1067_v38 = vmul.f32 %v1537_v39, %v1035_v14  ;;  %vm1073_vm2 = vweird.f32 %v1537_v39 }
 0x55e   :  { %1385 = vmatmul.msk.f32.gmra.mxu3 %vm72_vm0, %v1087_v26  ;;  %vm1074_vm4 = vmor %vm1072_vm3, %vm1073_vm2 }
 0x55f   :  { %v1068_v50 = vmul.f32 %v1537_v39, %v1067_v38  ;;  %v1065_v29 = vsel %vm1064_vm1, %v1535_v13, %v1061_v28 }
 0x560   :  { %v1078_v30 = vmul.f32 %v1065_v29, %v1030_v49 }
 0x561   :  { %v1069_v31 = vmul.f32 0.5, %v1068_v50 }
 0x562   :  { %v1083_v19 = vmul.f32 %v2112_v40, %v1078_v30 }
 0x563   :  { %v1070_v10 = vsub.f32 1.5, %v1069_v31 }
 0x564   :  { %v1088_v23 = vadd.f32 %v2115_v34, %v1083_v19 }
 0x565   :  { %v1071_v35 = vmul.f32 %v1537_v39, %v1070_v10  ;;  %v2185_v10 = vperm.slane %v2053_v53, 5 }
 0x566   :  { %1386 = vmatmul.msk.f32.gmra.mxu3 %vm72_vm0, %v1088_v23 }
 0x567   :  { %v1075_v3 = vsel %vm1074_vm4, %v1537_v39, %v1071_v35  ;;  %v2188_v35 = vperm.slane %v2053_v53, 6 }
 0x568   :  { %v1079_v16 = vmul.f32 %v1075_v3, %v1031_v62 }
 0x56a   :  { %v1084_v41 = vmul.f32 %v2112_v40, %v1079_v16  ;;  %v1092_v40 = vpop.permute.xlu1 %1091 }
 0x56c   :  { %v1089_v42 = vadd.f32 %v2115_v34, %v1084_v41 }
 0x56e   :  { %1387 = vmatmul.msk.f32.gmra.mxu3 %vm72_vm0, %v1089_v42 }
 0x5be   :  { %v1123_v32 = vpop.f32.mrf.mxu3 }
 0x5bf   :  { %v1124_v34 = vadd.f32 %v1123_v32, %v1092_v40 }
 0x5c1   :  { %v1135_v46 = vmax.f32 %v1124_v34, 0.0 }
 0x5c3   :  { %1388 = vmatmul.msk.f32.vlgmr.msra.gmra.mxu0 %vm1148_vm5, %v1135_v46 }
 0x5e1   :  { %v1126_v48 = vpop.f32.mrf.mxu3 }
 0x5e2   :  { %v1127_v12 = vadd.f32 %v1126_v48, %v1092_v40 }
 0x5e4   :  { %v1136_v43 = vmax.f32 %v1127_v12, 0.0 }
 0x5e6   :  { %1389 = vmatmul.msk.f32.gmra.mxu0 %vm1148_vm5, %v1136_v43 }
 0x5e9   :  { %v1129_v11 = vpop.f32.mrf.mxu3 }
 0x5ea   :  { %v1130_v51 = vadd.f32 %v1129_v11, %v1092_v40 }
 0x5ec   :  { %v1137_v22 = vmax.f32 %v1130_v51, 0.0 }
 0x5ee   :  { %1390 = vmatmul.msk.f32.gmra.mxu0 %vm1148_vm5, %v1137_v22 }
 0x5f1   :  { %v1132_v7 = vpop.f32.mrf.mxu3 }
 0x5f2   :  { %v1133_v55 = vadd.f32 %v1132_v7, %v1092_v40 }
 0x5f4   :  { %v1138_v25 = vmax.f32 %v1133_v55, 0.0 }
 0x5f6   :  { %1391 = vmatmul.msk.f32.gmra.mxu0 %vm1148_vm5, %v1138_v25 }
 0x640   :  { %v1178_v37 = vpop.f32.mrf.mxu0 }
 0x641   :  { %v1179_v36 = vadd.f32 %v1178_v37, %v1147_v56 }
 0x643   :  { %v1190_v47 = vadd.f32 %v1179_v36, %v2119_v21 }
 0x645   :  { %v1194_v57 = vsel %vm72_vm0, %v1190_v47, 0.0  ;;  %v1210_v52 = vmul.f32 %v1190_v47, %v1190_v47 }
 0x646   :  { %1195 = vadd.xlane.f32.xlu2 %v1194_v57 }
 0x647   :  { %v1214_v58 = vsel %vm72_vm0, %v1210_v52, 0.0 }
 0x64e   :  { %1215 = vadd.xlane.f32.xlu2 %v1214_v58 }
 0x663   :  { %v1181_v59 = vpop.f32.mrf.mxu0 }
 0x664   :  { %v1182_v60 = vadd.f32 %v1181_v59, %v1147_v56 }
 0x666   :  { %v2163_v2 = vadd.f32 %v1182_v60, %v1087_v26 }
 0x668   :  { %v1197_v61 = vsel %vm72_vm0, %v2163_v2, 0.0  ;;  %v1211_v1 = vmul.f32 %v2163_v2, %v2163_v2 }
 0x669   :  { %1198 = vadd.xlane.f32.xlu0 %v1197_v61 }
 0x66a   :  { %v1217_v27 = vsel %vm72_vm0, %v1211_v1, 0.0 }
 0x66b   :  { %v1184_v63 = vpop.f32.mrf.mxu0 }
 0x66c   :  { %v1185_v6 = vadd.f32 %v1184_v63, %v1147_v56 }
 0x66e   :  { %v2167_v8 = vadd.f32 %v1185_v6, %v1088_v23 }
 0x670   :  { %v1200_v21 = vsel %vm72_vm0, %v2167_v8, 0.0  ;;  %v1212_v20 = vmul.f32 %v2167_v8, %v2167_v8 }
 0x671   :  { %1201 = vadd.xlane.f32.xlu2 %v1200_v21 }
 0x672   :  { %v1220_v9 = vsel %vm72_vm0, %v1212_v20, 0.0 }
 0x673   :  { %v1187_v13 = vpop.f32.mrf.mxu0  ;;  %1221 = vadd.xlane.f32.xlu1 %v1220_v9 }
 0x674   :  { %v1188_v14 = vadd.f32 %v1187_v13, %v1147_v56 }
 0x676   :  { %v2174_v15 = vadd.f32 %v1188_v14, %v1089_v42 }
 0x678   :  { %v1203_v4 = vsel %vm72_vm0, %v2174_v15, 0.0  ;;  %v1213_v33 = vmul.f32 %v2174_v15, %v2174_v15 }
 0x679   :  { %1204 = vadd.xlane.f32.xlu0 %v1203_v4 }
 0x67a   :  { %v1223_v0 = vsel %vm72_vm0, %v1213_v33, 0.0 }
 0x67b   :  { %1224 = vadd.xlane.f32.xlu2 %v1223_v0 }
 0x681   :  { %1218 = vadd.xlane.f32.xlu0 %v1217_v27 }
 0x6b9   :  { %v1196_v17 = vpop.xlane.xlu2 %1195 }
 0x6ba   :  { %v1206_v54 = vmul.f32 0.03125, %v1196_v17 }
 0x6bc   :  { %v1230_v18 = vmul.f32 %v1206_v54, %v1206_v54  ;;  %v1238_v19 = vsub.f32 %v1190_v47, %v1206_v54 }
 0x6c1   :  { %v1216_v24 = vpop.xlane.xlu2 %1215 }
 0x6c2   :  { %v1226_v39 = vmul.f32 0.03125, %v1216_v24 }
 0x6c4   :  { %v1234_v26 = vsub.f32 %v1226_v39, %v1230_v18 }
 0x6c6   :  { %v1242_v28 = vadd.f32 1e-05, %v1234_v26 }
 0x6c8   :  { %1538 = vrsqrt.f32 %v1242_v28  ;;  %vm1252_vm7 = vweird.f32 %v1242_v28 }
 0x6ce   :  { %v1539_v38 = vpop.eup %1538 }
 0x6cf   :  { %v1247_v49 = vmul.f32 %v1539_v38, %v1242_v28  ;;  %vm1253_vm6 = vweird.f32 %v1539_v38 }
 0x6d0   :  { %vm1254_vm8 = vmor %vm1252_vm7, %vm1253_vm6 }
 0x6d1   :  { %v1248_v50 = vmul.f32 %v1539_v38, %v1247_v49 }
 0x6d3   :  { %v1249_v29 = vmul.f32 0.5, %v1248_v50 }
 0x6d5   :  { %v1250_v30 = vsub.f32 1.5, %v1249_v29 }
 0x6d7   :  { %v1251_v31 = vmul.f32 %v1539_v38, %v1250_v30 }
 0x6d9   :  { %v1255_v23 = vsel %vm1254_vm8, %v1539_v38, %v1251_v31 }
 0x6da   :  { %v1286_v62 = vmul.f32 %v1255_v23, %v1238_v19 }
 0x6dc   :  { %v1291_v3 = vmul.f32 %v2185_v10, %v1286_v62  ;;  %v1199_v41 = vpop.xlane.xlu0 %1198 }
 0x6dd   :  { %v1207_v11 = vmul.f32 0.03125, %v1199_v41 }
 0x6de   :  { %v1296_v16 = vadd.f32 %v2188_v35, %v1291_v3 }
 0x6df   :  { %v1231_v56 = vmul.f32 %v1207_v11, %v1207_v11  ;;  %v1239_v28 = vsub.f32 %v2163_v2, %v1207_v11 }
 0x6e0   :  { %1300 = vst.msk [vmem:[#allocation7] sm:$0xff] %vm72_vm0, %v1296_v16 }
 0x6e4   :  { %v1202_v42 = vpop.xlane.xlu2 %1201 }
 0x6e5   :  { %v1208_v44 = vmul.f32 0.03125, %v1202_v42 }
 0x6e6   :  { %v1222_v5 = vpop.xlane.xlu1 %1221 }
 0x6e7   :  { %v1232_v45 = vmul.f32 %v1208_v44, %v1208_v44  ;;  %v1228_v40 = vmul.f32 0.03125, %v1222_v5  ;;  %v1240_v63 = vsub.f32 %v2167_v8, %v1208_v44 }
 0x6e9   :  { %v1236_v32 = vsub.f32 %v1228_v40, %v1232_v45 }
 0x6eb   :  { %v1244_v34 = vadd.f32 1e-05, %v1236_v32 }
 0x6ec   :  { %v1205_v46 = vpop.xlane.xlu0 %1204 }
 0x6ed   :  { %1540 = vrsqrt.f32 %v1244_v34  ;;  %v1209_v48 = vmul.f32 0.03125, %v1205_v46  ;;  %vm1272_vm10 = vweird.f32 %v1244_v34 }
 0x6ee   :  { %v1225_v53 = vpop.xlane.xlu2 %1224 }
 0x6ef   :  { %v1233_v12 = vmul.f32 %v1209_v48, %v1209_v48  ;;  %v1229_v43 = vmul.f32 0.03125, %v1225_v53  ;;  %v1241_v8 = vsub.f32 %v2174_v15, %v1209_v48 }
 0x6f1   :  { %v1237_v51 = vsub.f32 %v1229_v43, %v1233_v12 }
 0x6f3   :  { %v1541_v22 = vpop.eup %1540  ;;  %v1245_v7 = vadd.f32 1e-05, %v1237_v51 }
 0x6f4   :  { %v1267_v55 = vmul.f32 %v1541_v22, %v1244_v34  ;;  %v1219_v25 = vpop.xlane.xlu0 %1218  ;;  %vm1273_vm9 = vweird.f32 %v1541_v22 }
 0x6f5   :  { %1542 = vrsqrt.f32 %v1245_v7  ;;  %v1227_v37 = vmul.f32 0.03125, %v1219_v25  ;;  %vm1274_vm11 = vmor %vm1272_vm10, %vm1273_vm9  ;;  %vm1282_vm13 = vweird.f32 %v1245_v7 }
 0x6f6   :  { %v1268_v36 = vmul.f32 %v1541_v22, %v1267_v55 }
 0x6f7   :  { %v1235_v47 = vsub.f32 %v1227_v37, %v1231_v56 }
 0x6f8   :  { %v1269_v57 = vmul.f32 0.5, %v1268_v36 }
 0x6f9   :  { %v1243_v52 = vadd.f32 1e-05, %v1235_v47 }
 0x6fa   :  { %v1270_v58 = vsub.f32 1.5, %v1269_v57 }
 0x6fb   :  { %v1543_v59 = vpop.eup %1542  ;;  %1544 = vrsqrt.f32 %v1243_v52  ;;  %vm1262_vm1 = vweird.f32 %v1243_v52 }
 0x6fc   :  { %v1271_v60 = vmul.f32 %v1541_v22, %v1270_v58  ;;  %v1277_v61 = vmul.f32 %v1543_v59, %v1245_v7  ;;  %vm1283_vm12 = vweird.f32 %v1543_v59 }
 0x6fd   :  { %vm1284_vm14 = vmor %vm1282_vm13, %vm1283_vm12 }
 0x6fe   :  { %v1275_v6 = vsel %vm1274_vm11, %v1541_v22, %v1271_v60  ;;  %v1278_v21 = vmul.f32 %v1543_v59, %v1277_v61 }
 0x6ff   :  { %v1288_v20 = vmul.f32 %v1275_v6, %v1240_v63 }
 0x700   :  { %v1279_v9 = vmul.f32 0.5, %v1278_v21 }
 0x701   :  { %v1545_v13 = vpop.eup %1544  ;;  %v1293_v14 = vmul.f32 %v2185_v10, %v1288_v20 }
 0x702   :  { %v1280_v4 = vsub.f32 1.5, %v1279_v9  ;;  %v1257_v33 = vmul.f32 %v1545_v13, %v1243_v52  ;;  %vm1263_vm15 = vweird.f32 %v1545_v13 }
 0x703   :  { %v1298_v0 = vadd.f32 %v2188_v35, %v1293_v14  ;;  %vm1264_vm2 = vmor %vm1262_vm1, %vm1263_vm15 }
 0x704   :  { %v1281_v1 = vmul.f32 %v1543_v59, %v1280_v4  ;;  %v1258_v27 = vmul.f32 %v1545_v13, %v1257_v33 }
 0x705   :  { %1302 = vst.msk [vmem:[#allocation7 + $0x10] sm:$0xff] %vm72_vm0, %v1298_v0 }
 0x706   :  { %v1285_v17 = vsel %vm1284_vm14, %v1543_v59, %v1281_v1  ;;  %v1259_v54 = vmul.f32 0.5, %v1258_v27 }
 0x707   :  { %v1289_v24 = vmul.f32 %v1285_v17, %v1241_v8 }
 0x708   :  { %v1260_v18 = vsub.f32 1.5, %v1259_v54 }
 0x709   :  { %v1294_v39 = vmul.f32 %v2185_v10, %v1289_v24 }
 0x70a   :  { %v1261_v26 = vmul.f32 %v1545_v13, %v1260_v18 }
 0x70b   :  { %v1299_v38 = vadd.f32 %v2188_v35, %v1294_v39 }
 0x70c   :  { %v1265_v49 = vsel %vm1264_vm2, %v1545_v13, %v1261_v26 }
 0x70d   :  { %1303 = vst.msk [vmem:[#allocation7 + $0x18] sm:$0xff] %vm72_vm0, %v1299_v38  ;;  %v1287_v50 = vmul.f32 %v1265_v49, %v1239_v28 }
 0x70f   :  { %v1292_v15 = vmul.f32 %v2185_v10, %v1287_v50 }
 0x711   :  { %v1297_v29 = vadd.f32 %v2188_v35, %v1292_v15 }
 0x713   :  { %1301 = vst.msk [vmem:[#allocation7 + $0x8] sm:$0xff] %vm72_vm0, %v1297_v29 }
 0x714   :  { %1316 = dma.vmem_to_hbm [thread:$0]  %s1309_s13, 512, %s1311_s16, [#allocation4], %s1630_s26, %s1630_s26, %s1631_s27  }
 0x715   :  { %1627 = dma.done.wait [#allocation4], 512  }
 0x716   :  { %1628 = vsyncadd [#allocation4], 4294966784 }
 0x717   :  { %1321 = vsyncpa [#allocation3], 1 }
 0x718   :  { %1322 = vsyncpa [#allocation6], 1 }
 0x719   :  { %1323 = vsyncpa [#allocation4], 1 }

</bundles_post_ra>
